<compile_context>
chip_gen: v5e
topology: v5e:2x2
jax: 0.10.0
libtpu: 0.0.40
codegen_flags: <defaults>
</compile_context>

<pallas_src>
import jax
import jax.numpy as jnp
from jax.experimental import pallas as pl
from jax.experimental.pallas import tpu as pltpu

D_BERT = 768
D_AFFINE = 1024
D_BOTTLENECK = 128


def _selector_kernel(x_ref, w_ref, b_ref, o_ref):
    # x: [bm, 768] f32   w: [768, 768] bf16   b: [1, 768] f32   o: [bm, 768] f32
    x = x_ref[...].astype(jnp.bfloat16)          # MXU consumes bf16 natively
    acc = jnp.dot(x, w_ref[...], preferred_element_type=jnp.float32)
    o_ref[...] = (acc + b_ref[...]).astype(o_ref.dtype)   # bias add in f32 (v5e-safe)


def response_selector_head(cls_rep, params):
    """Fused affine -> bottleneck -> final head as a single Pallas MXU matmul."""
    B = cls_rep.shape[0]
    w_eff, b_eff = params["w_eff"], params["b_eff"]

    # Single block for small B; tile the batch (and let the two v7x TCs split
    # it via "parallel") only once B is large enough to amortize the per-core
    # weight DMA.
    bm = 256 if (B >= 512 and B % 256 == 0) else B
    grid = (B // bm,)

    flops = 2 * B * D_BERT * D_BERT + B * D_BERT
    bytes_accessed = (cls_rep.size * 4          # f32 activations in
                      + w_eff.size * 2          # bf16 fused weights
                      + b_eff.size * 4          # f32 fused bias
                      + B * D_BERT * 4)         # f32 output

    return pl.pallas_call(
        _selector_kernel,
        out_shape=jax.ShapeDtypeStruct((B, D_BERT), jnp.float32),
        grid=grid,
        in_specs=[
            pl.BlockSpec((bm, D_BERT), lambda i: (i, 0)),
            pl.BlockSpec((D_BERT, D_BERT), lambda i: (0, 0)),  # weights stay resident
            pl.BlockSpec((1, D_BERT), lambda i: (0, 0)),
        ],
        out_specs=pl.BlockSpec((bm, D_BERT), lambda i: (i, 0)),
        compiler_params=pltpu.CompilerParams(
            dimension_semantics=("parallel",),
            vmem_limit_bytes=16 << 20,           # fits v7x's 64 MiB physical VMEM
        ),
        cost_estimate=pl.CostEstimate(
            flops=flops, transcendentals=0, bytes_accessed=bytes_accessed),
    )(cls_rep, w_eff, b_eff)


def init_params(key):
    """Deterministic synthetic parameter init (shapes follow the nn.Linear defs)."""
    ks = jax.random.split(key, 4)

    def linear(kw, fan_in, fan_out):
        # torch.nn.Linear default init: U(-1/sqrt(fan_in), 1/sqrt(fan_in)),
        # stored here as [in, out] so y = x @ W + b (== torch's x @ W.T + b).
        bound = 1.0 / jnp.sqrt(fan_in)
        w = jax.random.uniform(kw, (fan_in, fan_out), jnp.float32, -bound, bound)
        b = jax.random.uniform(
            jax.random.fold_in(kw, 1), (1, fan_out), jnp.float32, -bound, bound
        )
        return w, b

    w1, b1 = linear(ks[0], D_BERT, D_AFFINE)        # affine
    w2, b2 = linear(ks[1], D_AFFINE, D_BOTTLENECK)  # bottleneck
    w3, b3 = linear(ks[2], D_BOTTLENECK, D_BERT)    # final

    # Exact algebraic fusion (no activation between the three Linear layers
    # in the reference module), done once at init in f32.
    w_eff = (w1 @ w2) @ w3                          # [768, 768]
    b_eff = ((b1 @ w2) @ w3) + (b2 @ w3) + b3       # [1, 768]

    # TODO(synk): frozen pretrained BERT encoder has no self-contained Pallas
    # equivalent (needs a checkpoint); a deterministic embedding table stands
    # in for cont_reps below.
    vocab = 512
    emb = jax.random.normal(ks[3], (vocab, D_BERT), jnp.float32) * 0.02

    return {
        "w1": w1, "b1": b1, "w2": w2, "b2": b2, "w3": w3, "b3": b3,
        "w_eff": w_eff.astype(jnp.bfloat16),   # streamed bf16: halves weight DMA
        "b_eff": b_eff.astype(jnp.float32),
        "emb": emb, "vocab": vocab,
    }


def response_selector_forward(seq, attn_masks, params):
    """Full forward: synthetic 'BERT' CLS vector (glue) + Pallas fused head."""
    # Only the CLS token is consumed downstream: gather just seq[:, 0] instead
    # of materializing the full [B, T, 768] cont_reps and slicing it.
    cls_rep = params["emb"][seq[:, 0]] * attn_masks[:, 0, None].astype(jnp.float32)
    return response_selector_head(cls_rep, params)


if __name__ == "__main__":
    key = jax.random.PRNGKey(0)
    k_param, k_seq, k_mask = jax.random.split(key, 3)

    B, T = 8, 16
    params = init_params(k_param)
    seq = jax.random.randint(k_seq, (B, T), 0, params["vocab"], dtype=jnp.int32)
    attn_masks = jnp.ones((B, T), dtype=jnp.int32)

    out = response_selector_forward(seq, attn_masks, params)
    out = jax.block_until_ready(out)
    assert out.shape == (B, D_BERT)

    cls_rep = params["emb"][seq[:, 0]] * attn_masks[:, 0, None].astype(jnp.float32)

    # (a) Tight check against a pure-JAX version of the fused bf16 kernel.
    ref_fused = jnp.dot(cls_rep.astype(jnp.bfloat16), params["w_eff"],
                        preferred_element_type=jnp.float32) + params["b_eff"]
    assert jnp.allclose(out, ref_fused, atol=1e-4, rtol=1e-4)

    # (b) Semantic check against the original unfused f32 three-Linear chain
    #     (loose tolerance only because weights are streamed in bf16).
    ref = cls_rep @ params["w1"] + params["b1"]
    ref = ref @ params["w2"] + params["b2"]
    ref = ref @ params["w3"] + params["b3"]
    assert jnp.allclose(out, ref, atol=2e-3, rtol=2e-2)

    print("KERNEL_OK")
</pallas_src>

<mosaic_0001>
module attributes {stable_mosaic.version = 11 : i64} {
  func.func @_selector_kernel(%arg0: i32, %arg1: memref<8x768xf32, #tpu.memory_space<vmem>>, %arg2: memref<768x768xbf16, #tpu.memory_space<vmem>>, %arg3: memref<1x768xf32, #tpu.memory_space<vmem>>, %arg4: memref<8x768xf32, #tpu.memory_space<vmem>>) attributes {dimension_semantics = [#tpu.dimension_semantics<parallel>], iteration_bounds = array<i64: 1>, scalar_prefetch = 0 : i64, scratch_operands = 0 : i64, tpu.core_type = #tpu.core_type<tc>, window_params = [{transform_indices = @transform_0, window_bounds = array<i64: 8, 768>}, {pipeline_mode = #tpu.pipeline_mode<synchronous>, transform_indices = @transform_1, window_bounds = array<i64: 768, 768>}, {pipeline_mode = #tpu.pipeline_mode<synchronous>, transform_indices = @transform_2, window_bounds = array<i64: 1, 768>}, {transform_indices = @transform_3, window_bounds = array<i64: 8, 768>}]} {
    %c0 = arith.constant 0 : index
    %c0_0 = arith.constant 0 : index
    %0 = vector.load %arg1[%c0, %c0_0] : memref<8x768xf32, #tpu.memory_space<vmem>>, vector<8x768xf32>
    %1 = arith.truncf %0 : vector<8x768xf32> to vector<8x768xbf16>
    %c0_1 = arith.constant 0 : index
    %c0_2 = arith.constant 0 : index
    %2 = vector.load %arg2[%c0_1, %c0_2] : memref<768x768xbf16, #tpu.memory_space<vmem>>, vector<768x768xbf16>
    %cst = arith.constant dense<0.000000e+00> : vector<8x768xf32>
    %3 = tpu.matmul %1, %2, %cst {dimension_numbers = #tpu.dot_dimension_numbers<[1], [0], [0], [1], [0, 0, 1, 1], [], []>} : vector<8x768xbf16>, vector<768x768xbf16>, vector<8x768xf32> -> vector<8x768xf32>
    %c0_3 = arith.constant 0 : index
    %c0_4 = arith.constant 0 : index
    %4 = vector.load %arg3[%c0_3, %c0_4] : memref<1x768xf32, #tpu.memory_space<vmem>>, vector<1x768xf32>
    %5 = vector.broadcast %4 : vector<1x768xf32> to vector<8x768xf32>
    %6 = arith.addf %3, %5 : vector<8x768xf32>
    %c0_5 = arith.constant 0 : index
    %c0_6 = arith.constant 0 : index
    %7 = vector.load %arg4[%c0_5, %c0_6] : memref<8x768xf32, #tpu.memory_space<vmem>>, vector<8x768xf32>
    tpu.vector_store %arg4[%c0_5, %c0_6], %6 {strides = array<i32>} : memref<8x768xf32, #tpu.memory_space<vmem>>, vector<8x768xf32>,
    return
  }
  func.func @transform_0(%arg0: i32) -> (i32, i32) {
    %c0_i32 = arith.constant 0 : i32
    %c0_i32_0 = arith.constant 0 : i32
    return %arg0, %c0_i32 : i32, i32
  }
  func.func @transform_1(%arg0: i32) -> (i32, i32) {
    %c0_i32 = arith.constant 0 : i32
    %c0_i32_0 = arith.constant 0 : i32
    %c0_i32_1 = arith.constant 0 : i32
    return %c0_i32, %c0_i32_0 : i32, i32
  }
  func.func @transform_2(%arg0: i32) -> (i32, i32) {
    %c0_i32 = arith.constant 0 : i32
    %c0_i32_0 = arith.constant 0 : i32
    %c0_i32_1 = arith.constant 0 : i32
    return %c0_i32, %c0_i32_0 : i32, i32
  }
  func.func @transform_3(%arg0: i32) -> (i32, i32) {
    %c0_i32 = arith.constant 0 : i32
    %c0_i32_0 = arith.constant 0 : i32
    return %arg0, %c0_i32 : i32, i32
  }
}

</mosaic_0001>

<bundles_post_ra>
// kernel: tpu_custom_call.1
= control target key start
LH: loop header
LB: loop body
LE: loop exit
PB: predicated region body
PF: predicated region fallthrough
CT: control target
= control target key end

     0   :  { %8 = vsyncpa [#allocation3], 0  ;;  %s3960_s0 = inlined_call_operand.hbm [shape: f32[8,768], index: 0, kind: input, shape index: {}]   ;;  %s3961_s1 = inlined_call_operand.hbm [shape: bf16[768,768], index: 1, kind: input, shape index: {}]   ;;  %s3962_s2 = inlined_call_operand.hbm [shape: f32[1,768], index: 2, kind: input, shape index: {}]   ;;  %s3963_s3 = inlined_call_operand.hbm [shape: f32[8,768], index: 3, kind: output, shape index: {}]  }
   0x1   :  { %9 = vsyncpa [#allocation6], 0  ;;  %s26_s14 = sshll.u32 %s3961_s1, 4  ;;  %s27_s14 = int_to_ptr.hbm [resolvable:$true] %s26_s14 }
   0x2   :  { %10 = vsyncpa [#allocation4], 0  ;;  %s3853_s15 = smov [#allocation5]   ;;  %s16_s19 = sshll.u32 %s3960_s0, 4  ;;  %s17_s19 = int_to_ptr.hbm [resolvable:$true] %s16_s19 }
   0x3   :  { %s28_s16 = sshll.u32 %s3853_s15, 4  ;;  %s3854_s20 = smov 384   ;;  %s29_s16 = int_to_ptr.vmem [resolvable:$true] %s28_s16 }
   0x4   :  { %s3855_s21 = smov 24   ;;  %s3856_s22 = smov [#allocation2]  }
   0x5   :  { %34 = dma.hbm_to_vmem [thread:$0]  %s27_s14, 36864, %s29_s16, [#allocation6], %s3854_s20, %s3854_s20, %s3855_s21  }
   0x6   :  { %s18_s23 = sshll.u32 %s3856_s22, 4  ;;  %s40_s26 = sshll.u32 %s3962_s2, 4  ;;  %s19_s23 = int_to_ptr.vmem [resolvable:$true] %s18_s23  ;;  %s41_s26 = int_to_ptr.hbm [resolvable:$true] %s40_s26 }
   0x7   :  { %21 = dma.hbm_to_vmem [thread:$0]  %s17_s19, 768, %s19_s23, [#allocation3]  }
   0x8   :  { %s3857_s1 = smov [#allocation7]  }
   0x9   :  { %s42_s27 = sshll.u32 %s3857_s1, 4  ;;  %s43_s27 = int_to_ptr.vmem [resolvable:$true] %s42_s27 }
   0xa   :  { %45 = dma.hbm_to_vmem [thread:$0]  %s41_s26, 96, %s43_s27, [#allocation6]  }
   0xb   :  { %3847 = dma.done.wait [#allocation3], 768  }
   0xc   :  { %3848 = vsyncadd [#allocation3], 4294966528 }
   0xd   :  { %3849 = dma.done.wait [#allocation6], 36960  }
   0xe   :  { %3850 = vsyncadd [#allocation6], 4294930336  ;;  %v2474_v0 = vld [vmem:[#allocation5 + $0x150] sm:$0xf]  ;;  %v3501_v1 = vld [vmem:[#allocation5 + $0x164] sm:$0xf0] }
   0xf   :  { %v2666_v2 = vld [vmem:[#allocation5 + $0x2d0] sm:$0xf]  ;;  %v2475_v3 = vor.u32 %v3501_v1, %v2474_v0  ;;  %v3549_v4 = vld [vmem:[#allocation5 + $0x2e4] sm:$0xf0]  ;;  %v2450_v11 = vld [vmem:[#allocation5 + $0x120] sm:$0xf] }
  0x10   :  { %v2858_v5 = vld [vmem:[#allocation5 + $0x450] sm:$0xf]  ;;  %v3597_v6 = vld [vmem:[#allocation5 + $0x464] sm:$0xf0]  ;;  %v2667_v7 = vor.u32 %v3549_v4, %v2666_v2  ;;  %v3495_v13 = vld [vmem:[#allocation5 + $0x134] sm:$0xf0] }
  0x11   :  { %v2859_v8 = vor.u32 %v3597_v6, %v2858_v5  ;;  %v3050_v9 = vld [vmem:[#allocation5 + $0x5d0] sm:$0xf]  ;;  %v3645_v10 = vld [vmem:[#allocation5 + $0x5e4] sm:$0xf0]  ;;  %1812 = vmatpush.bf16.msra.mxu0 %v2475_v3  ;;  %v2642_v14 = vld [vmem:[#allocation5 + $0x2a0] sm:$0xf]  ;;  %v2451_v16 = vor.u32 %v3495_v13, %v2450_v11 }
  0x12   :  { %v3051_v12 = vor.u32 %v3645_v10, %v3050_v9  ;;  %v3543_v15 = vld [vmem:[#allocation5 + $0x2b4] sm:$0xf0]  ;;  %1825 = vmatpush.bf16.msra.mxu1 %v2667_v7  ;;  %v2834_v18 = vld [vmem:[#allocation5 + $0x420] sm:$0xf]  ;;  %v2426_v23 = vld [vmem:[#allocation5 + $0xf0] sm:$0xf] }
  0x13   :  { %1838 = vmatpush.bf16.msra.mxu2 %v2859_v8  ;;  %v2643_v17 = vor.u32 %v3543_v15, %v2642_v14  ;;  %v3591_v19 = vld [vmem:[#allocation5 + $0x434] sm:$0xf0]  ;;  %v3026_v20 = vld [vmem:[#allocation5 + $0x5a0] sm:$0xf]  ;;  %v3489_v24 = vld [vmem:[#allocation5 + $0x104] sm:$0xf0] }
  0x14   :  { %1851 = vmatpush.bf16.msra.mxu3 %v3051_v12  ;;  %v2835_v21 = vor.u32 %v3591_v19, %v2834_v18  ;;  %v3639_v22 = vld [vmem:[#allocation5 + $0x5b4] sm:$0xf0]  ;;  %v2618_v26 = vld [vmem:[#allocation5 + $0x270] sm:$0xf]  ;;  %v3537_v27 = vld [vmem:[#allocation5 + $0x284] sm:$0xf0]  ;;  %v2427_v29 = vor.u32 %v3489_v24, %v2426_v23 }
  0x15   :  { %v3027_v25 = vor.u32 %v3639_v22, %v3026_v20  ;;  %v2810_v28 = vld [vmem:[#allocation5 + $0x3f0] sm:$0xf]  ;;  %1813 = vmatpush.bf16.msra.mxu0 %v2451_v16  ;;  %v3585_v30 = vld [vmem:[#allocation5 + $0x404] sm:$0xf0]  ;;  %v2619_v33 = vor.u32 %v3537_v27, %v2618_v26  ;;  %v2402_v35 = vld [vmem:[#allocation5 + $0xc0] sm:$0xf] }
  0x16   :  { %v3002_v31 = vld [vmem:[#allocation5 + $0x570] sm:$0xf]  ;;  %v3633_v32 = vld [vmem:[#allocation5 + $0x584] sm:$0xf0]  ;;  %1826 = vmatpush.bf16.msra.mxu1 %v2643_v17  ;;  %v2811_v34 = vor.u32 %v3585_v30, %v2810_v28  ;;  %v3483_v36 = vld [vmem:[#allocation5 + $0xd4] sm:$0xf0] }
  0x17   :  { %1839 = vmatpush.bf16.msra.mxu2 %v2835_v21  ;;  %v2594_v37 = vld [vmem:[#allocation5 + $0x240] sm:$0xf]  ;;  %v3003_v38 = vor.u32 %v3633_v32, %v3002_v31  ;;  %v3531_v39 = vld [vmem:[#allocation5 + $0x254] sm:$0xf0]  ;;  %v2403_v44 = vor.u32 %v3483_v36, %v2402_v35  ;;  %v2378_v47 = vld [vmem:[#allocation5 + $0x90] sm:$0xf] }
  0x18   :  { %1852 = vmatpush.bf16.msra.mxu3 %v3027_v25  ;;  %v2786_v40 = vld [vmem:[#allocation5 + $0x3c0] sm:$0xf]  ;;  %v3579_v41 = vld [vmem:[#allocation5 + $0x3d4] sm:$0xf0]  ;;  %v2595_v45 = vor.u32 %v3531_v39, %v2594_v37  ;;  %v3477_v48 = vld [vmem:[#allocation5 + $0xa4] sm:$0xf0] }
  0x19   :  { %v2978_v42 = vld [vmem:[#allocation5 + $0x540] sm:$0xf]  ;;  %v3627_v43 = vld [vmem:[#allocation5 + $0x554] sm:$0xf0]  ;;  %1814 = vmatpush.bf16.msra.mxu0 %v2427_v29  ;;  %v2787_v46 = vor.u32 %v3579_v41, %v2786_v40  ;;  %v2570_v49 = vld [vmem:[#allocation5 + $0x210] sm:$0xf]  ;;  %v2379_v56 = vor.u32 %v3477_v48, %v2378_v47 }
  0x1a   :  { %1827 = vmatpush.bf16.msra.mxu1 %v2619_v33  ;;  %v2979_v50 = vor.u32 %v3627_v43, %v2978_v42  ;;  %v3525_v51 = vld [vmem:[#allocation5 + $0x224] sm:$0xf0]  ;;  %v2762_v52 = vld [vmem:[#allocation5 + $0x390] sm:$0xf]  ;;  %v2354_v59 = vld [vmem:[#allocation5 + $0x60] sm:$0xf] }
  0x1b   :  { %1840 = vmatpush.bf16.msra.mxu2 %v2811_v34  ;;  %v3573_v53 = vld [vmem:[#allocation5 + $0x3a4] sm:$0xf0]  ;;  %v2954_v54 = vld [vmem:[#allocation5 + $0x510] sm:$0xf]  ;;  %v2571_v57 = vor.u32 %v3525_v51, %v2570_v49  ;;  %v3471_v60 = vld [vmem:[#allocation5 + $0x74] sm:$0xf0] }
  0x1c   :  { %1853 = vmatpush.bf16.msra.mxu3 %v3003_v38  ;;  %v3621_v55 = vld [vmem:[#allocation5 + $0x524] sm:$0xf0]  ;;  %v2763_v58 = vor.u32 %v3573_v53, %v2762_v52  ;;  %v2546_v61 = vld [vmem:[#allocation5 + $0x1e0] sm:$0xf]  ;;  %v3519_v63 = vld [vmem:[#allocation5 + $0x1f4] sm:$0xf0]  ;;  %v2355_v4 = vor.u32 %v3471_v60, %v2354_v59 }
  0x1d   :  { %1815 = vmatpush.bf16.msra.mxu0 %v2403_v44  ;;  %v2955_v62 = vor.u32 %v3621_v55, %v2954_v54  ;;  %v2738_v0 = vld [vmem:[#allocation5 + $0x360] sm:$0xf]  ;;  %v3567_v1 = vld [vmem:[#allocation5 + $0x374] sm:$0xf0]  ;;  %v2547_v5 = vor.u32 %v3519_v63, %v2546_v61  ;;  %v2330_v7 = vld [vmem:[#allocation5 + $0x30] sm:$0xf] }
  0x1e   :  { %1828 = vmatpush.bf16.msra.mxu1 %v2595_v45  ;;  %v2930_v2 = vld [vmem:[#allocation5 + $0x4e0] sm:$0xf]  ;;  %v3615_v3 = vld [vmem:[#allocation5 + $0x4f4] sm:$0xf0]  ;;  %v2739_v6 = vor.u32 %v3567_v1, %v2738_v0  ;;  %v3465_v8 = vld [vmem:[#allocation5 + $0x44] sm:$0xf0] }
  0x1f   :  { %1841 = vmatpush.bf16.msra.mxu2 %v2787_v46  ;;  %v2522_v9 = vld [vmem:[#allocation5 + $0x1b0] sm:$0xf]  ;;  %v2931_v10 = vor.u32 %v3615_v3, %v2930_v2  ;;  %v3513_v11 = vld [vmem:[#allocation5 + $0x1c4] sm:$0xf0]  ;;  %v2331_v16 = vor.u32 %v3465_v8, %v2330_v7  ;;  %v2306_v17 = vld [vmem:[#allocation5] sm:$0xf] }
  0x20   :  { %1854 = vmatpush.bf16.msra.mxu3 %v2979_v50  ;;  %v2714_v12 = vld [vmem:[#allocation5 + $0x330] sm:$0xf]  ;;  %v3561_v13 = vld [vmem:[#allocation5 + $0x344] sm:$0xf0]  ;;  %v3459_v18 = vld [vmem:[#allocation5 + $0x14] sm:$0xf0]  ;;  %v2523_v19 = vor.u32 %v3513_v11, %v2522_v9 }
  0x21   :  { %1816 = vmatpush.bf16.msra.mxu0 %v2379_v56  ;;  %v2906_v14 = vld [vmem:[#allocation5 + $0x4b0] sm:$0xf]  ;;  %v3609_v15 = vld [vmem:[#allocation5 + $0x4c4] sm:$0xf0]  ;;  %v2715_v20 = vor.u32 %v3561_v13, %v2714_v12  ;;  %v2498_v21 = vld [vmem:[#allocation5 + $0x180] sm:$0xf]  ;;  %v2307_v31 = vor.u32 %v3459_v18, %v2306_v17 }
  0x22   :  { %1829 = vmatpush.bf16.msra.mxu1 %v2571_v57  ;;  %v3507_v22 = vld [vmem:[#allocation5 + $0x194] sm:$0xf0]  ;;  %v2690_v23 = vld [vmem:[#allocation5 + $0x300] sm:$0xf]  ;;  %v2907_v24 = vor.u32 %v3609_v15, %v2906_v14  ;;  %v3242_v28 = vld [vmem:[#allocation5 + $0x750] sm:$0xf] }
  0x23   :  { %1842 = vmatpush.bf16.msra.mxu2 %v2763_v58  ;;  %v3555_v25 = vld [vmem:[#allocation5 + $0x314] sm:$0xf0]  ;;  %v2882_v26 = vld [vmem:[#allocation5 + $0x480] sm:$0xf]  ;;  %v3693_v29 = vld [vmem:[#allocation5 + $0x764] sm:$0xf0]  ;;  %v2499_v35 = vor.u32 %v3507_v22, %v2498_v21 }
  0x24   :  { %1855 = vmatpush.bf16.msra.mxu3 %v2955_v62  ;;  %v3603_v27 = vld [vmem:[#allocation5 + $0x494] sm:$0xf0]  ;;  %v3434_v30 = vld [vmem:[#allocation5 + $0x8d0] sm:$0xf]  ;;  %v3741_v32 = vld [vmem:[#allocation5 + $0x8e4] sm:$0xf0]  ;;  %v2691_v36 = vor.u32 %v3555_v25, %v2690_v23  ;;  %v3243_v40 = vor.u32 %v3693_v29, %v3242_v28 }
  0x25   :  { %1817 = vmatpush.bf16.msra.mxu0 %v2355_v4  ;;  %v3498_v33 = vld [vmem:[#allocation5 + $0x154] sm:$0xf]  ;;  %v2476_v34 = vld [vmem:[#allocation5 + $0x168] sm:$0xf0]  ;;  %v2883_v39 = vor.u32 %v3603_v27, %v2882_v26  ;;  %v3435_v41 = vor.u32 %v3741_v32, %v3434_v30  ;;  %v3218_v43 = vld [vmem:[#allocation5 + $0x720] sm:$0xf] }
  0x26   :  { %1830 = vmatpush.bf16.msra.mxu1 %v2547_v5  ;;  %v3546_v37 = vld [vmem:[#allocation5 + $0x2d4] sm:$0xf]  ;;  %v2668_v38 = vld [vmem:[#allocation5 + $0x2e8] sm:$0xf0]  ;;  %v2479_v42 = vor.u32 %v3498_v33, %v2476_v34  ;;  %v3687_v44 = vld [vmem:[#allocation5 + $0x734] sm:$0xf0] }
  0x27   :  { %1843 = vmatpush.bf16.msra.mxu2 %v2739_v6  ;;  %v3410_v45 = vld [vmem:[#allocation5 + $0x8a0] sm:$0xf]  ;;  %v2671_v46 = vor.u32 %v3546_v37, %v2668_v38  ;;  %v3735_v47 = vld [vmem:[#allocation5 + $0x8b4] sm:$0xf0]  ;;  %v3492_v48 = vld [vmem:[#allocation5 + $0x124] sm:$0xf]  ;;  %v3219_v52 = vor.u32 %v3687_v44, %v3218_v43 }
  0x28   :  { %1856 = vmatpush.bf16.msra.mxu3 %v2931_v10  ;;  %v2452_v49 = vld [vmem:[#allocation5 + $0x138] sm:$0xf0]  ;;  %v3540_v50 = vld [vmem:[#allocation5 + $0x2a4] sm:$0xf]  ;;  %v3194_v53 = vld [vmem:[#allocation5 + $0x6f0] sm:$0xf]  ;;  %v3411_v54 = vor.u32 %v3735_v47, %v3410_v45 }
  0x29   :  { %1818 = vmatpush.bf16.msra.mxu0 %v2331_v16  ;;  %v2644_v51 = vld [vmem:[#allocation5 + $0x2b8] sm:$0xf0]  ;;  %v2455_v55 = vor.u32 %v3492_v48, %v2452_v49  ;;  %v3681_v56 = vld [vmem:[#allocation5 + $0x704] sm:$0xf0]  ;;  %v3386_v57 = vld [vmem:[#allocation5 + $0x870] sm:$0xf] }
  0x2a   :  { %1831 = vmatpush.bf16.msra.mxu1 %v2523_v19  ;;  %v3729_v58 = vld [vmem:[#allocation5 + $0x884] sm:$0xf0]  ;;  %v2647_v59 = vor.u32 %v3540_v50, %v2644_v51  ;;  %v3486_v60 = vld [vmem:[#allocation5 + $0xf4] sm:$0xf]  ;;  %v2428_v61 = vld [vmem:[#allocation5 + $0x108] sm:$0xf0]  ;;  %v3195_v1 = vor.u32 %v3681_v56, %v3194_v53 }
  0x2b   :  { %1844 = vmatpush.bf16.msra.mxu2 %v2715_v20  ;;  %v3534_v62 = vld [vmem:[#allocation5 + $0x274] sm:$0xf]  ;;  %v2620_v63 = vld [vmem:[#allocation5 + $0x288] sm:$0xf0]  ;;  %v3170_v0 = vld [vmem:[#allocation5 + $0x6c0] sm:$0xf]  ;;  %v3387_v2 = vor.u32 %v3729_v58, %v3386_v57  ;;  %v2431_v6 = vor.u32 %v3486_v60, %v2428_v61 }
  0x2c   :  { %1857 = vmatpush.bf16.msra.mxu3 %v2907_v24  ;;  %v3675_v3 = vld [vmem:[#allocation5 + $0x6d4] sm:$0xf0]  ;;  %v58_v4 = vld [vmem:[#allocation2] sm:$0xff]  ;;  %v60_v5 = vld [vmem:[#allocation2 + $0x10] sm:$0xff]  ;;  %v2623_v12 = vor.u32 %v3534_v62, %v2620_v63  ;;  %s3858_s0 = smov [#allocation8]   ;;  %s2293_s30 = sshll.u32 %s3963_s3, 4  ;;  %s2294_s30 = int_to_ptr.hbm [resolvable:$true] %s2293_s30 }
  0x2d   :  { %1819 = vmatpush.bf16.msra.mxu0 %v2307_v31  ;;  %v3362_v7 = vld [vmem:[#allocation5 + $0x840] sm:$0xf]  ;;  %v3888_v8 = vpack.c.bf16 %v58_v4, %v58_v4  ;;  %v3890_v9 = vpack.c.bf16 %v60_v5, %v60_v5  ;;  %v61_v10 = vld [vmem:[#allocation2 + $0x18] sm:$0xff]  ;;  %v59_v11 = vld [vmem:[#allocation2 + $0x8] sm:$0xff]  ;;  %v3171_v20 = vor.u32 %v3675_v3, %v3170_v0  ;;  %s2291_s2 = sshll.u32 %s3858_s0, 4  ;;  %s2292_s2 = int_to_ptr.vmem [resolvable:$true] %s2291_s2 }
  0x2e   :  { %1832 = vmatpush.bf16.msra.mxu1 %v2499_v35  ;;  %v3723_v13 = vld [vmem:[#allocation5 + $0x854] sm:$0xf0]  ;;  %v3480_v14 = vld [vmem:[#allocation5 + $0xc4] sm:$0xf]  ;;  %v2404_v15 = vld [vmem:[#allocation5 + $0xd8] sm:$0xf0]  ;;  %v3892_v16 = vpack.c.bf16 %v61_v10, %v61_v10  ;;  %v3894_v17 = vpack.c.bf16 %v59_v11, %v59_v11 }
  0x2f   :  { %1845 = vmatpush.bf16.msra.mxu2 %v2691_v36  ;;  %v3528_v18 = vld [vmem:[#allocation5 + $0x244] sm:$0xf]  ;;  %v2596_v19 = vld [vmem:[#allocation5 + $0x258] sm:$0xf0]  ;;  %v3363_v21 = vor.u32 %v3723_v13, %v3362_v7  ;;  %v2407_v22 = vor.u32 %v3480_v14, %v2404_v15  ;;  %v3146_v23 = vld [vmem:[#allocation5 + $0x690] sm:$0xf] }
  0x30   :  { %1858 = vmatpush.bf16.msra.mxu3 %v2883_v39  ;;  %1820 = vmatmul.bf16.vlgmr.msra.gmra.mxu0 %v3888_v8  ;;  %v3669_v24 = vld [vmem:[#allocation5 + $0x6a4] sm:$0xf0]  ;;  %v3338_v25 = vld [vmem:[#allocation5 + $0x810] sm:$0xf]  ;;  %v2599_v26 = vor.u32 %v3528_v18, %v2596_v19  ;;  %v3474_v28 = vld [vmem:[#allocation5 + $0x94] sm:$0xf] }
  0x31   :  { %1864 = vmatpush.bf16.msrb.mxu0 %v3243_v40  ;;  %v3717_v27 = vld [vmem:[#allocation5 + $0x824] sm:$0xf0]  ;;  %v2380_v29 = vld [vmem:[#allocation5 + $0xa8] sm:$0xf0]  ;;  %1833 = vmatmul.bf16.vlgmr.msra.gmra.mxu1 %v3894_v17  ;;  %v3522_v30 = vld [vmem:[#allocation5 + $0x214] sm:$0xf]  ;;  %v3147_v32 = vor.u32 %v3669_v24, %v3146_v23 }
  0x32   :  { %1877 = vmatpush.bf16.msrb.mxu1 %v3435_v41  ;;  %1846 = vmatmul.bf16.vlgmr.msra.gmra.mxu2 %v3890_v9  ;;  %v2572_v31 = vld [vmem:[#allocation5 + $0x228] sm:$0xf0]  ;;  %v3339_v33 = vor.u32 %v3717_v27, %v3338_v25  ;;  %v2383_v34 = vor.u32 %v3474_v28, %v2380_v29  ;;  %v3122_v35 = vld [vmem:[#allocation5 + $0x660] sm:$0xf]  ;;  %v3663_v36 = vld [vmem:[#allocation5 + $0x674] sm:$0xf0] }
  0x33   :  { %1890 = vmatpush.bf16.msrb.mxu2 %v2479_v42  ;;  %1859 = vmatmul.bf16.vlgmr.msra.gmra.mxu3 %v3892_v16  ;;  %v3314_v37 = vld [vmem:[#allocation5 + $0x7e0] sm:$0xf]  ;;  %v2575_v38 = vor.u32 %v3522_v30, %v2572_v31  ;;  %v3711_v39 = vld [vmem:[#allocation5 + $0x7f4] sm:$0xf0]  ;;  %v3468_v40 = vld [vmem:[#allocation5 + $0x64] sm:$0xf]  ;;  %v3123_v44 = vor.u32 %v3663_v36, %v3122_v35 }
  0x34   :  { %1903 = vmatpush.bf16.msrb.mxu3 %v2671_v46  ;;  %v2356_v41 = vld [vmem:[#allocation5 + $0x78] sm:$0xf0]  ;;  %v3516_v42 = vld [vmem:[#allocation5 + $0x1e4] sm:$0xf]  ;;  %v3315_v45 = vor.u32 %v3711_v39, %v3314_v37  ;;  %v3098_v47 = vld [vmem:[#allocation5 + $0x630] sm:$0xf] }
  0x35   :  { %1865 = vmatpush.bf16.msrb.mxu0 %v3219_v52  ;;  %v2548_v43 = vld [vmem:[#allocation5 + $0x1f8] sm:$0xf0]  ;;  %v2359_v46 = vor.u32 %v3468_v40, %v2356_v41  ;;  %v3657_v48 = vld [vmem:[#allocation5 + $0x644] sm:$0xf0]  ;;  %v3290_v49 = vld [vmem:[#allocation5 + $0x7b0] sm:$0xf] }
  0x36   :  { %1878 = vmatpush.bf16.msrb.mxu1 %v3411_v54  ;;  %v2551_v50 = vor.u32 %v3516_v42, %v2548_v43  ;;  %v3705_v51 = vld [vmem:[#allocation5 + $0x7c4] sm:$0xf0]  ;;  %v3462_v52 = vld [vmem:[#allocation5 + $0x34] sm:$0xf]  ;;  %v2332_v53 = vld [vmem:[#allocation5 + $0x48] sm:$0xf0]  ;;  %v3099_v56 = vor.u32 %v3657_v48, %v3098_v47 }
  0x37   :  { %1891 = vmatpush.bf16.msrb.mxu2 %v2455_v55  ;;  %v3510_v54 = vld [vmem:[#allocation5 + $0x1b4] sm:$0xf]  ;;  %v2524_v55 = vld [vmem:[#allocation5 + $0x1c8] sm:$0xf0]  ;;  %v3074_v57 = vld [vmem:[#allocation5 + $0x600] sm:$0xf]  ;;  %v2335_v60 = vor.u32 %v3462_v52, %v2332_v53 }
  0x38   :  { %1904 = vmatpush.bf16.msrb.mxu3 %v2647_v59  ;;  %v3651_v58 = vld [vmem:[#allocation5 + $0x614] sm:$0xf0]  ;;  %v3291_v59 = vor.u32 %v3705_v51, %v3290_v49  ;;  %v3266_v61 = vld [vmem:[#allocation5 + $0x780] sm:$0xf]  ;;  %v3456_v63 = vld [vmem:[#allocation5 + $0x4] sm:$0xf]  ;;  %v2527_v0 = vor.u32 %v3510_v54, %v2524_v55 }
  0x39   :  { %1866 = vmatpush.bf16.msrb.mxu0 %v3195_v1  ;;  %v3699_v62 = vld [vmem:[#allocation5 + $0x794] sm:$0xf0]  ;;  %v2308_v1 = vld [vmem:[#allocation5 + $0x18] sm:$0xf0]  ;;  %v3594_v4 = vld [vmem:[#allocation5 + $0x454] sm:$0xf]  ;;  %v3075_v7 = vor.u32 %v3651_v58, %v3074_v57 }
  0x3a   :  { %1879 = vmatpush.bf16.msrb.mxu1 %v3387_v2  ;;  %v3504_v2 = vld [vmem:[#allocation5 + $0x184] sm:$0xf]  ;;  %v2500_v3 = vld [vmem:[#allocation5 + $0x198] sm:$0xf0]  ;;  %v2860_v5 = vld [vmem:[#allocation5 + $0x468] sm:$0xf0]  ;;  %v3267_v13 = vor.u32 %v3699_v62, %v3266_v61  ;;  %v2311_v14 = vor.u32 %v3456_v63, %v2308_v1 }
  0x3b   :  { %1892 = vmatpush.bf16.msrb.mxu2 %v2431_v6  ;;  %v3642_v6 = vld [vmem:[#allocation5 + $0x5d4] sm:$0xf]  ;;  %v3052_v10 = vld [vmem:[#allocation5 + $0x5e8] sm:$0xf0]  ;;  %v3588_v25 = vld [vmem:[#allocation5 + $0x424] sm:$0xf] }
  0x3c   :  { %1905 = vmatpush.bf16.msrb.mxu3 %v2623_v12  ;;  %v3690_v11 = vld [vmem:[#allocation5 + $0x754] sm:$0xf]  ;;  %v3244_v12 = vld [vmem:[#allocation5 + $0x768] sm:$0xf0]  ;;  %v3055_v23 = vor.u32 %v3642_v6, %v3052_v10  ;;  %v3636_v27 = vld [vmem:[#allocation5 + $0x5a4] sm:$0xf] }
  0x3d   :  { %1867 = vmatpush.bf16.msrb.mxu0 %v3171_v20  ;;  %v3738_v15 = vld [vmem:[#allocation5 + $0x8d4] sm:$0xf]  ;;  %v3436_v18 = vld [vmem:[#allocation5 + $0x8e8] sm:$0xf0]  ;;  %v2503_v20 = vor.u32 %v3504_v2, %v2500_v3  ;;  %v3247_v24 = vor.u32 %v3690_v11, %v3244_v12  ;;  %v3028_v29 = vld [vmem:[#allocation5 + $0x5b8] sm:$0xf0] }
  0x3e   :  { %1880 = vmatpush.bf16.msrb.mxu1 %v3363_v21  ;;  %v62_v19 = vld [vmem:[#allocation2 + $0x20] sm:$0xff]  ;;  %v2863_v21 = vor.u32 %v3594_v4, %v2860_v5  ;;  %v3439_v28 = vor.u32 %v3738_v15, %v3436_v18  ;;  %v3684_v30 = vld [vmem:[#allocation5 + $0x724] sm:$0xf]  ;;  %v3220_v31 = vld [vmem:[#allocation5 + $0x738] sm:$0xf0]  ;;  %v3031_v37 = vor.u32 %v3636_v27, %v3028_v29 }
  0x3f   :  { %1893 = vmatpush.bf16.msrb.mxu2 %v2407_v22  ;;  %v63_v22 = vld [vmem:[#allocation2 + $0x28] sm:$0xff]  ;;  %v3582_v39 = vld [vmem:[#allocation5 + $0x3f4] sm:$0xf]  ;;  %v2812_v40 = vld [vmem:[#allocation5 + $0x408] sm:$0xf0] }
  0x40   :  { %1906 = vmatpush.bf16.msrb.mxu3 %v2599_v26  ;;  %v2836_v26 = vld [vmem:[#allocation5 + $0x438] sm:$0xf0]  ;;  %v3902_v35 = vpack.c.bf16 %v63_v22, %v63_v22  ;;  %v3630_v41 = vld [vmem:[#allocation5 + $0x574] sm:$0xf]  ;;  %v3004_v43 = vld [vmem:[#allocation5 + $0x588] sm:$0xf0]  ;;  %v2815_v48 = vor.u32 %v3582_v39, %v2812_v40 }
  0x41   :  { %1868 = vmatpush.bf16.msrb.mxu0 %v3147_v32  ;;  %v3900_v32 = vpack.c.bf16 %v62_v19, %v62_v19  ;;  %v2839_v36 = vor.u32 %v3588_v25, %v2836_v26  ;;  %v3388_v47 = vld [vmem:[#allocation5 + $0x888] sm:$0xf0]  ;;  %v3007_v49 = vor.u32 %v3630_v41, %v3004_v43  ;;  %v3576_v51 = vld [vmem:[#allocation5 + $0x3c4] sm:$0xf]  ;;  %v2788_v52 = vld [vmem:[#allocation5 + $0x3d8] sm:$0xf0] }
  0x42   :  { %1881 = vmatpush.bf16.msrb.mxu1 %v3339_v33  ;;  %v3732_v33 = vld [vmem:[#allocation5 + $0x8a4] sm:$0xf]  ;;  %v2980_v55 = vld [vmem:[#allocation5 + $0x558] sm:$0xf0]  ;;  %v3570_v63 = vld [vmem:[#allocation5 + $0x394] sm:$0xf] }
  0x43   :  { %1894 = vmatpush.bf16.msrb.mxu2 %v2383_v34  ;;  %v3412_v34 = vld [vmem:[#allocation5 + $0x8b8] sm:$0xf0]  ;;  %v3624_v53 = vld [vmem:[#allocation5 + $0x544] sm:$0xf]  ;;  %v3618_v1 = vld [vmem:[#allocation5 + $0x514] sm:$0xf] }
  0x44   :  { %1907 = vmatpush.bf16.msrb.mxu3 %v2575_v38  ;;  %v3223_v38 = vor.u32 %v3684_v30, %v3220_v31  ;;  %v3415_v42 = vor.u32 %v3732_v33, %v3412_v34  ;;  %v3172_v57 = vld [vmem:[#allocation5 + $0x6d8] sm:$0xf0]  ;;  %v3720_v58 = vld [vmem:[#allocation5 + $0x844] sm:$0xf]  ;;  %v2983_v61 = vor.u32 %v3624_v53, %v2980_v55  ;;  %v2956_v3 = vld [vmem:[#allocation5 + $0x528] sm:$0xf0] }
  0x45   :  { %1869 = vmatpush.bf16.msrb.mxu0 %v3123_v44  ;;  %v3678_v44 = vld [vmem:[#allocation5 + $0x6f4] sm:$0xf]  ;;  %v3148_v5 = vld [vmem:[#allocation5 + $0x6a8] sm:$0xf0]  ;;  %v2959_v11 = vor.u32 %v3618_v1, %v2956_v3  ;;  %v3612_v15 = vld [vmem:[#allocation5 + $0x4e4] sm:$0xf] }
  0x46   :  { %1882 = vmatpush.bf16.msrb.mxu1 %v3315_v45  ;;  %v3196_v45 = vld [vmem:[#allocation5 + $0x708] sm:$0xf0]  ;;  %v3666_v4 = vld [vmem:[#allocation5 + $0x694] sm:$0xf]  ;;  %v2932_v19 = vld [vmem:[#allocation5 + $0x4f8] sm:$0xf0] }
  0x47   :  { %1895 = vmatpush.bf16.msrb.mxu2 %v2359_v46  ;;  %v3726_v46 = vld [vmem:[#allocation5 + $0x874] sm:$0xf]  ;;  %v3151_v12 = vor.u32 %v3666_v4, %v3148_v5  ;;  %v3708_v22 = vld [vmem:[#allocation5 + $0x7e4] sm:$0xf]  ;;  %v2935_v25 = vor.u32 %v3612_v15, %v2932_v19  ;;  %v2908_v31 = vld [vmem:[#allocation5 + $0x4c8] sm:$0xf0] }
  0x48   :  { %1908 = vmatpush.bf16.msrb.mxu3 %v2551_v50  ;;  %v3199_v50 = vor.u32 %v3678_v44, %v3196_v45  ;;  %v3391_v54 = vor.u32 %v3726_v46, %v3388_v47  ;;  %v3714_v6 = vld [vmem:[#allocation5 + $0x814] sm:$0xf]  ;;  %v3100_v34 = vld [vmem:[#allocation5 + $0x648] sm:$0xf0]  ;;  %v3552_v39 = vld [vmem:[#allocation5 + $0x304] sm:$0xf] }
  0x49   :  { %1870 = vmatpush.bf16.msrb.mxu0 %v3099_v56  ;;  %v3672_v56 = vld [vmem:[#allocation5 + $0x6c4] sm:$0xf]  ;;  %v3558_v27 = vld [vmem:[#allocation5 + $0x334] sm:$0xf]  ;;  %v2692_v40 = vld [vmem:[#allocation5 + $0x318] sm:$0xf0] }
  0x4a   :  { %1883 = vmatpush.bf16.msrb.mxu1 %v3291_v59  ;;  %v3364_v59 = vld [vmem:[#allocation5 + $0x858] sm:$0xf0]  ;;  %v3175_v62 = vor.u32 %v3672_v56, %v3172_v57  ;;  %v3606_v29 = vld [vmem:[#allocation5 + $0x4b4] sm:$0xf]  ;;  %v3600_v43 = vld [vmem:[#allocation5 + $0x484] sm:$0xf]  ;;  %v2695_v53 = vor.u32 %v3552_v39, %v2692_v40 }
  0x4b   :  { %1896 = vmatpush.bf16.msrb.mxu2 %v2335_v60  ;;  %v2791_v60 = vor.u32 %v3576_v51, %v2788_v52  ;;  %v3367_v2 = vor.u32 %v3720_v58, %v3364_v59  ;;  %v3654_v33 = vld [vmem:[#allocation5 + $0x634] sm:$0xf]  ;;  %v2911_v41 = vor.u32 %v3606_v29, %v2908_v31  ;;  %v2884_v44 = vld [vmem:[#allocation5 + $0x498] sm:$0xf0]  ;;  %v3648_v45 = vld [vmem:[#allocation5 + $0x604] sm:$0xf] }
  0x4c   :  { %1909 = vmatpush.bf16.msrb.mxu3 %v2527_v0  ;;  %v2764_v0 = vld [vmem:[#allocation5 + $0x3a8] sm:$0xf0]  ;;  %v3076_v47 = vld [vmem:[#allocation5 + $0x618] sm:$0xf0]  ;;  %v3502_v51 = vld [vmem:[#allocation5 + $0x16c] sm:$0xf0]  ;;  %v2887_v57 = vor.u32 %v3600_v43, %v2884_v44 }
  0x4d   :  { %1871 = vmatpush.bf16.msrb.mxu0 %v3075_v7  ;;  %v3340_v7 = vld [vmem:[#allocation5 + $0x828] sm:$0xf0]  ;;  %v2767_v10 = vor.u32 %v3570_v63, %v2764_v0  ;;  %v2674_v52 = vld [vmem:[#allocation5 + $0x2d8] sm:$0xf]  ;;  %v3598_v56 = vld [vmem:[#allocation5 + $0x46c] sm:$0xf0]  ;;  %v3079_v58 = vor.u32 %v3648_v45, %v3076_v47 }
  0x4e   :  { %1884 = vmatpush.bf16.msrb.mxu1 %v3267_v13  ;;  %v3564_v13 = vld [vmem:[#allocation5 + $0x364] sm:$0xf]  ;;  %v3343_v18 = vor.u32 %v3714_v6, %v3340_v7  ;;  %v2866_v55 = vld [vmem:[#allocation5 + $0x458] sm:$0xf]  ;;  %v2458_v1 = vld [vmem:[#allocation5 + $0x128] sm:$0xf] }
  0x4f   :  { %1897 = vmatpush.bf16.msrb.mxu2 %v2311_v14  ;;  %v2740_v14 = vld [vmem:[#allocation5 + $0x378] sm:$0xf0]  ;;  %v3058_v59 = vld [vmem:[#allocation5 + $0x5d8] sm:$0xf]  ;;  %v2867_v0 = vor.u32 %v3598_v56, %v2866_v55  ;;  %v2650_v3 = vld [vmem:[#allocation5 + $0x2a8] sm:$0xf] }
  0x50   :  { %1910 = vmatpush.bf16.msrb.mxu3 %v2503_v20  ;;  %1872 = vmatmul.bf16.vlgmr.msrb.gmra.mxu0 %v3900_v32  ;;  %v3660_v20 = vld [vmem:[#allocation5 + $0x664] sm:$0xf]  ;;  %v3544_v5 = vld [vmem:[#allocation5 + $0x2bc] sm:$0xf0]  ;;  %v2842_v6 = vld [vmem:[#allocation5 + $0x428] sm:$0xf] }
  0x51   :  { %1916 = vmatpush.bf16.msra.mxu0 %v2863_v21  ;;  %1885 = vmatmul.bf16.vlgmr.msrb.gmra.mxu1 %v3902_v35  ;;  %v3124_v21 = vld [vmem:[#allocation5 + $0x678] sm:$0xf0]  ;;  %v3592_v7 = vld [vmem:[#allocation5 + $0x43c] sm:$0xf0]  ;;  %v2434_v15 = vld [vmem:[#allocation5 + $0xf8] sm:$0xf] }
  0x52   :  { %1929 = vmatpush.bf16.msra.mxu1 %v3055_v23  ;;  %1898 = vmatmul.bf16.vlgmr.msrb.gmra.mxu2 %v3888_v8  ;;  %v3316_v23 = vld [vmem:[#allocation5 + $0x7f8] sm:$0xf0]  ;;  %v3127_v26 = vor.u32 %v3660_v20, %v3124_v21  ;;  %v2626_v19 = vld [vmem:[#allocation5 + $0x278] sm:$0xf]  ;;  %v3538_v21 = vld [vmem:[#allocation5 + $0x28c] sm:$0xf0] }
  0x53   :  { %1942 = vmatpush.bf16.msra.mxu2 %v3247_v24  ;;  %1911 = vmatmul.bf16.vlgmr.msrb.gmra.mxu3 %v3894_v17  ;;  %v2743_v24 = vor.u32 %v3564_v13, %v2740_v14  ;;  %v3319_v30 = vor.u32 %v3708_v22, %v3316_v23  ;;  %v2651_v13 = vor.u32 %v3544_v5, %v2650_v3  ;;  %v2818_v22 = vld [vmem:[#allocation5 + $0x3f8] sm:$0xf]  ;;  %v3586_v23 = vld [vmem:[#allocation5 + $0x40c] sm:$0xf0]  ;;  %v2410_v29 = vld [vmem:[#allocation5 + $0xc8] sm:$0xf] }
  0x54   :  { %1955 = vmatpush.bf16.msra.mxu3 %v3439_v28  ;;  %v2716_v28 = vld [vmem:[#allocation5 + $0x348] sm:$0xf0]  ;;  %v2843_v14 = vor.u32 %v3592_v7, %v2842_v6  ;;  %v2602_v31 = vld [vmem:[#allocation5 + $0x248] sm:$0xf]  ;;  %v3628_v39 = vld [vmem:[#allocation5 + $0x55c] sm:$0xf0] }
  0x55   :  { %1917 = vmatpush.bf16.msra.mxu0 %v2839_v36  ;;  %v3702_v36 = vld [vmem:[#allocation5 + $0x7b4] sm:$0xf]  ;;  %v2386_v43 = vld [vmem:[#allocation5 + $0x98] sm:$0xf]  ;;  %v3478_v44 = vld [vmem:[#allocation5 + $0xac] sm:$0xf0] }
  0x56   :  { %1930 = vmatpush.bf16.msra.mxu1 %v3031_v37  ;;  %v3292_v37 = vld [vmem:[#allocation5 + $0x7c8] sm:$0xf0]  ;;  %v2578_v45 = vld [vmem:[#allocation5 + $0x218] sm:$0xf]  ;;  %v3526_v47 = vld [vmem:[#allocation5 + $0x22c] sm:$0xf0] }
  0x57   :  { %1943 = vmatpush.bf16.msra.mxu2 %v3223_v38  ;;  %v2719_v38 = vor.u32 %v3558_v27, %v2716_v28  ;;  %v3295_v46 = vor.u32 %v3702_v36, %v3292_v37  ;;  %v2627_v27 = vor.u32 %v3538_v21, %v2626_v19  ;;  %v2819_v28 = vor.u32 %v3586_v23, %v2818_v22  ;;  %v2794_v36 = vld [vmem:[#allocation5 + $0x3c8] sm:$0xf]  ;;  %v3580_v37 = vld [vmem:[#allocation5 + $0x3dc] sm:$0xf0]  ;;  %v2338_v3 = vld [vmem:[#allocation5 + $0x38] sm:$0xf] }
  0x58   :  { %1956 = vmatpush.bf16.msra.mxu3 %v3415_v42  ;;  %v3103_v42 = vor.u32 %v3654_v33, %v3100_v34  ;;  %v3532_v34 = vld [vmem:[#allocation5 + $0x25c] sm:$0xf0]  ;;  %v2362_v55 = vld [vmem:[#allocation5 + $0x68] sm:$0xf]  ;;  %v2530_v5 = vld [vmem:[#allocation5 + $0x1b8] sm:$0xf] }
  0x59   :  { %1918 = vmatpush.bf16.msra.mxu0 %v2815_v48  ;;  %v3696_v48 = vld [vmem:[#allocation5 + $0x784] sm:$0xf]  ;;  %v3472_v56 = vld [vmem:[#allocation5 + $0x7c] sm:$0xf0]  ;;  %v3514_v7 = vld [vmem:[#allocation5 + $0x1cc] sm:$0xf0] }
  0x5a   :  { %1931 = vmatpush.bf16.msra.mxu1 %v3007_v49  ;;  %v3268_v49 = vld [vmem:[#allocation5 + $0x798] sm:$0xf0]  ;;  %v2531_v19 = vor.u32 %v3514_v7, %v2530_v5  ;;  %v2506_v21 = vld [vmem:[#allocation5 + $0x188] sm:$0xf]  ;;  %v3508_v22 = vld [vmem:[#allocation5 + $0x19c] sm:$0xf0] }
  0x5b   :  { %1944 = vmatpush.bf16.msra.mxu2 %v3199_v50  ;;  %v2482_v50 = vld [vmem:[#allocation5 + $0x158] sm:$0xf]  ;;  %v2698_v23 = vld [vmem:[#allocation5 + $0x308] sm:$0xf] }
  0x5c   :  { %1957 = vmatpush.bf16.msra.mxu3 %v3391_v54  ;;  %v3550_v54 = vld [vmem:[#allocation5 + $0x2ec] sm:$0xf0]  ;;  %v3178_v5 = vld [vmem:[#allocation5 + $0x6c8] sm:$0xf] }
  0x5d   :  { %1919 = vmatpush.bf16.msra.mxu0 %v2791_v60  ;;  %v3646_v60 = vld [vmem:[#allocation5 + $0x5ec] sm:$0xf0]  ;;  %v2675_v63 = vor.u32 %v3550_v54, %v2674_v52  ;;  %v2387_v52 = vor.u32 %v3478_v44, %v2386_v43  ;;  %v3370_v7 = vld [vmem:[#allocation5 + $0x848] sm:$0xf] }
  0x5e   :  { %1932 = vmatpush.bf16.msra.mxu1 %v2983_v61  ;;  %v3271_v61 = vor.u32 %v3696_v48, %v3268_v49  ;;  %v3059_v4 = vor.u32 %v3646_v60, %v3058_v59  ;;  %v2770_v48 = vld [vmem:[#allocation5 + $0x398] sm:$0xf]  ;;  %v3574_v49 = vld [vmem:[#allocation5 + $0x3ac] sm:$0xf0]  ;;  %v3520_v59 = vld [vmem:[#allocation5 + $0x1fc] sm:$0xf0] }
  0x5f   :  { %1945 = vmatpush.bf16.msra.mxu2 %v3175_v62  ;;  %v2483_v62 = vor.u32 %v3502_v51, %v2482_v50  ;;  %v2962_v50 = vld [vmem:[#allocation5 + $0x518] sm:$0xf]  ;;  %v3622_v51 = vld [vmem:[#allocation5 + $0x52c] sm:$0xf0]  ;;  %v2771_v54 = vor.u32 %v3574_v49, %v2770_v48  ;;  %v2746_v60 = vld [vmem:[#allocation5 + $0x368] sm:$0xf] }
  0x60   :  { %1958 = vmatpush.bf16.msra.mxu3 %v3367_v2  ;;  %v3496_v2 = vld [vmem:[#allocation5 + $0x13c] sm:$0xf0] }
  0x61   :  { %1920 = vmatpush.bf16.msra.mxu0 %v2767_v10  ;;  %v3034_v10 = vld [vmem:[#allocation5 + $0x5a8] sm:$0xf]  ;;  %v3736_v49 = vld [vmem:[#allocation5 + $0x8bc] sm:$0xf0] }
  0x62   :  { %1933 = vmatpush.bf16.msra.mxu1 %v2959_v11  ;;  %v3640_v11 = vld [vmem:[#allocation5 + $0x5bc] sm:$0xf0] }
  0x63   :  { %1946 = vmatpush.bf16.msra.mxu2 %v3151_v12  ;;  %v2459_v12 = vor.u32 %v3496_v2, %v2458_v1  ;;  %v3035_v20 = vor.u32 %v3640_v11, %v3034_v10  ;;  %v2722_v10 = vld [vmem:[#allocation5 + $0x338] sm:$0xf]  ;;  %v3562_v11 = vld [vmem:[#allocation5 + $0x34c] sm:$0xf0] }
  0x64   :  { %1959 = vmatpush.bf16.msra.mxu3 %v3343_v18  ;;  %v3490_v18 = vld [vmem:[#allocation5 + $0x10c] sm:$0xf0] }
  0x65   :  { %1921 = vmatpush.bf16.msra.mxu0 %v2743_v24  ;;  %v3010_v24 = vld [vmem:[#allocation5 + $0x578] sm:$0xf] }
  0x66   :  { %1934 = vmatpush.bf16.msra.mxu1 %v2935_v25  ;;  %v3634_v25 = vld [vmem:[#allocation5 + $0x58c] sm:$0xf0] }
  0x67   :  { %1947 = vmatpush.bf16.msra.mxu2 %v3127_v26  ;;  %v2435_v26 = vor.u32 %v3490_v18, %v2434_v15  ;;  %v3011_v33 = vor.u32 %v3634_v25, %v3010_v24  ;;  %v2314_v15 = vld [vmem:[#allocation5 + $0x8] sm:$0xf]  ;;  %v3460_v18 = vld [vmem:[#allocation5 + $0x1c] sm:$0xf0] }
  0x68   :  { %1960 = vmatpush.bf16.msra.mxu3 %v3319_v30  ;;  %v3484_v30 = vld [vmem:[#allocation5 + $0xdc] sm:$0xf0] }
  0x69   :  { %1922 = vmatpush.bf16.msra.mxu0 %v2719_v38  ;;  %v2986_v38 = vld [vmem:[#allocation5 + $0x548] sm:$0xf]  ;;  %v2411_v40 = vor.u32 %v3484_v30, %v2410_v29  ;;  %v3556_v25 = vld [vmem:[#allocation5 + $0x31c] sm:$0xf0]  ;;  %v3694_v29 = vld [vmem:[#allocation5 + $0x76c] sm:$0xf0] }
  0x6a   :  { %1935 = vmatpush.bf16.msra.mxu1 %v2911_v41  ;;  %v2603_v41 = vor.u32 %v3532_v34, %v2602_v31  ;;  %v3442_v30 = vld [vmem:[#allocation5 + $0x8d8] sm:$0xf]  ;;  %v2315_v31 = vor.u32 %v3460_v18, %v2314_v15  ;;  %v3499_v34 = vld [vmem:[#allocation5 + $0x15c] sm:$0xf]  ;;  %v2604_v15 = vld [vmem:[#allocation5 + $0x260] sm:$0xf0] }
  0x6b   :  { %1948 = vmatpush.bf16.msra.mxu2 %v3103_v42  ;;  %v2795_v42 = vor.u32 %v3580_v37, %v2794_v36  ;;  %v2484_v36 = vld [vmem:[#allocation5 + $0x170] sm:$0xf0]  ;;  %v2507_v37 = vor.u32 %v3508_v22, %v2506_v21  ;;  %v3154_v21 = vld [vmem:[#allocation5 + $0x698] sm:$0xf]  ;;  %v3670_v22 = vld [vmem:[#allocation5 + $0x6ac] sm:$0xf0] }
  0x6c   :  { %1961 = vmatpush.bf16.msra.mxu3 %v3295_v46  ;;  %v2987_v46 = vor.u32 %v3628_v39, %v2986_v38  ;;  %v2699_v38 = vor.u32 %v3556_v25, %v2698_v23  ;;  %v3547_v39 = vld [vmem:[#allocation5 + $0x2dc] sm:$0xf]  ;;  %v2487_v44 = vor.u32 %v3499_v34, %v2484_v36  ;;  %v3346_v23 = vld [vmem:[#allocation5 + $0x818] sm:$0xf]  ;;  %v3718_v25 = vld [vmem:[#allocation5 + $0x82c] sm:$0xf0] }
  0x6d   :  { %1923 = vmatpush.bf16.msra.mxu0 %v2695_v53  ;;  %v2579_v53 = vor.u32 %v3526_v47, %v2578_v45  ;;  %v3226_v45 = vld [vmem:[#allocation5 + $0x728] sm:$0xf]  ;;  %v3664_v36 = vld [vmem:[#allocation5 + $0x67c] sm:$0xf0] }
  0x6e   :  { %1936 = vmatpush.bf16.msra.mxu1 %v2887_v57  ;;  %v2554_v57 = vld [vmem:[#allocation5 + $0x1e8] sm:$0xf] }
  0x6f   :  { %1949 = vmatpush.bf16.msra.mxu2 %v3079_v58  ;;  %v2963_v58 = vor.u32 %v3622_v51, %v2962_v50  ;;  %v2555_v1 = vor.u32 %v3520_v59, %v2554_v57  ;;  %v3418_v47 = vld [vmem:[#allocation5 + $0x8a8] sm:$0xf]  ;;  %v3493_v50 = vld [vmem:[#allocation5 + $0x12c] sm:$0xf]  ;;  %v2460_v51 = vld [vmem:[#allocation5 + $0x140] sm:$0xf0] }
  0x70   :  { %1962 = vmatpush.bf16.msra.mxu3 %v3271_v61  ;;  %1924 = vmatmul.bf16.vlgmr.msra.gmra.mxu0 %v3890_v9  ;;  %v3568_v61 = vld [vmem:[#allocation5 + $0x37c] sm:$0xf0]  ;;  %v3202_v57 = vld [vmem:[#allocation5 + $0x6f8] sm:$0xf]  ;;  %v3130_v34 = vld [vmem:[#allocation5 + $0x668] sm:$0xf] }
  0x71   :  { %1968 = vmatpush.bf16.msrb.mxu0 %v2483_v62  ;;  %1937 = vmatmul.bf16.vlgmr.msra.gmra.mxu1 %v3892_v16  ;;  %v2938_v62 = vld [vmem:[#allocation5 + $0x4e8] sm:$0xf]  ;;  %v2747_v2 = vor.u32 %v3568_v61, %v2746_v60  ;;  %v3394_v59 = vld [vmem:[#allocation5 + $0x878] sm:$0xf]  ;;  %v3730_v61 = vld [vmem:[#allocation5 + $0x88c] sm:$0xf0] }
  0x72   :  { %1981 = vmatpush.bf16.msrb.mxu1 %v2675_v63  ;;  %1950 = vmatmul.bf16.vlgmr.msra.gmra.mxu2 %v3900_v32  ;;  %v3616_v63 = vld [vmem:[#allocation5 + $0x4fc] sm:$0xf0] }
  0x73   :  { %1994 = vmatpush.bf16.msrb.mxu2 %v2867_v0  ;;  %1963 = vmatmul.bf16.vlgmr.msra.gmra.mxu3 %v3902_v35  ;;  %v2363_v0 = vor.u32 %v3472_v56, %v2362_v55  ;;  %v2939_v6 = vor.u32 %v3616_v63, %v2938_v62  ;;  %v3419_v55 = vor.u32 %v3736_v49, %v3418_v47  ;;  %v3487_v62 = vld [vmem:[#allocation5 + $0xfc] sm:$0xf]  ;;  %v2436_v63 = vld [vmem:[#allocation5 + $0x110] sm:$0xf0]  ;;  %v3106_v47 = vld [vmem:[#allocation5 + $0x638] sm:$0xf] }
  0x74   :  { %2007 = vmatpush.bf16.msrb.mxu3 %v3059_v4  ;;  %v3466_v4 = vld [vmem:[#allocation5 + $0x4c] sm:$0xf0]  ;;  %v2463_v56 = vor.u32 %v3493_v50, %v2460_v51  ;;  %v3298_v49 = vld [vmem:[#allocation5 + $0x7b8] sm:$0xf] }
  0x75   :  { %1969 = vmatpush.bf16.msrb.mxu0 %v2459_v12  ;;  %v2914_v12 = vld [vmem:[#allocation5 + $0x4b8] sm:$0xf]  ;;  %v3706_v51 = vld [vmem:[#allocation5 + $0x7cc] sm:$0xf0] }
  0x76   :  { %1982 = vmatpush.bf16.msrb.mxu1 %v2651_v13  ;;  %v3610_v13 = vld [vmem:[#allocation5 + $0x4cc] sm:$0xf0] }
  0x77   :  { %1995 = vmatpush.bf16.msrb.mxu2 %v2843_v14  ;;  %v2339_v14 = vor.u32 %v3466_v4, %v2338_v3  ;;  %v2915_v24 = vor.u32 %v3610_v13, %v2914_v12  ;;  %v3395_v3 = vor.u32 %v3730_v61, %v3394_v59  ;;  %v2439_v4 = vor.u32 %v3487_v62, %v2436_v63  ;;  %v3481_v12 = vld [vmem:[#allocation5 + $0xcc] sm:$0xf]  ;;  %v2412_v13 = vld [vmem:[#allocation5 + $0xe0] sm:$0xf0]  ;;  %v3274_v61 = vld [vmem:[#allocation5 + $0x788] sm:$0xf] }
  0x78   :  { %2008 = vmatpush.bf16.msrb.mxu3 %v3035_v20  ;;  %v2723_v20 = vor.u32 %v3562_v11, %v2722_v10  ;;  %v3724_v11 = vld [vmem:[#allocation5 + $0x85c] sm:$0xf0]  ;;  %v3299_v59 = vor.u32 %v3706_v51, %v3298_v49  ;;  %v3457_v63 = vld [vmem:[#allocation5 + $0xc] sm:$0xf] }
  0x79   :  { %1970 = vmatpush.bf16.msrb.mxu0 %v2435_v26  ;;  %v2890_v26 = vld [vmem:[#allocation5 + $0x488] sm:$0xf]  ;;  %v3700_v62 = vld [vmem:[#allocation5 + $0x79c] sm:$0xf0]  ;;  %v3577_v49 = vld [vmem:[#allocation5 + $0x3cc] sm:$0xf] }
  0x7a   :  { %1983 = vmatpush.bf16.msrb.mxu1 %v2627_v27  ;;  %v3604_v27 = vld [vmem:[#allocation5 + $0x49c] sm:$0xf0]  ;;  %v3625_v51 = vld [vmem:[#allocation5 + $0x54c] sm:$0xf] }
  0x7b   :  { %1996 = vmatpush.bf16.msrb.mxu2 %v2819_v28  ;;  %v3250_v28 = vld [vmem:[#allocation5 + $0x758] sm:$0xf] }
  0x7c   :  { %2009 = vmatpush.bf16.msrb.mxu3 %v3011_v33  ;;  %v3742_v33 = vld [vmem:[#allocation5 + $0x8ec] sm:$0xf0] }
  0x7d   :  { %1971 = vmatpush.bf16.msrb.mxu0 %v2411_v40  ;;  %v2676_v40 = vld [vmem:[#allocation5 + $0x2f0] sm:$0xf0]  ;;  %v3443_v43 = vor.u32 %v3742_v33, %v3442_v30  ;;  %v3155_v30 = vor.u32 %v3670_v22, %v3154_v21 }
  0x7e   :  { %1984 = vmatpush.bf16.msrb.mxu1 %v2603_v41  ;;  %v2891_v41 = vor.u32 %v3604_v27, %v2890_v26  ;;  %v2679_v48 = vor.u32 %v3547_v39, %v2676_v40  ;;  %v3475_v26 = vld [vmem:[#allocation5 + $0x9c] sm:$0xf]  ;;  %v2388_v27 = vld [vmem:[#allocation5 + $0xb0] sm:$0xf0]  ;;  %v3712_v39 = vld [vmem:[#allocation5 + $0x7fc] sm:$0xf0] }
  0x7f   :  { %1997 = vmatpush.bf16.msrb.mxu2 %v2795_v42  ;;  %v3251_v42 = vor.u32 %v3694_v29, %v3250_v28  ;;  %v3523_v28 = vld [vmem:[#allocation5 + $0x21c] sm:$0xf]  ;;  %v2580_v29 = vld [vmem:[#allocation5 + $0x230] sm:$0xf0]  ;;  %v2391_v33 = vor.u32 %v3475_v26, %v2388_v27  ;;  %v3469_v40 = vld [vmem:[#allocation5 + $0x6c] sm:$0xf] }
  0x80   :  { %2010 = vmatpush.bf16.msrb.mxu3 %v2987_v46  ;;  %v3688_v46 = vld [vmem:[#allocation5 + $0x73c] sm:$0xf0]  ;;  %v3036_v27 = vld [vmem:[#allocation5 + $0x5c0] sm:$0xf0] }
  0x81   :  { %1972 = vmatpush.bf16.msrb.mxu0 %v2387_v52  ;;  %v3541_v52 = vld [vmem:[#allocation5 + $0x2ac] sm:$0xf] }
  0x82   :  { %1985 = vmatpush.bf16.msrb.mxu1 %v2579_v53  ;;  %v2652_v53 = vld [vmem:[#allocation5 + $0x2c0] sm:$0xf0] }
  0x83   :  { %1998 = vmatpush.bf16.msrb.mxu2 %v2771_v54  ;;  %v3227_v54 = vor.u32 %v3688_v46, %v3226_v45  ;;  %v2655_v60 = vor.u32 %v3541_v52, %v2652_v53  ;;  %v3463_v52 = vld [vmem:[#allocation5 + $0x3c] sm:$0xf]  ;;  %v2340_v53 = vld [vmem:[#allocation5 + $0x50] sm:$0xf0] }
  0x84   :  { %2011 = vmatpush.bf16.msrb.mxu3 %v2963_v58  ;;  %v3682_v58 = vld [vmem:[#allocation5 + $0x70c] sm:$0xf0] }
  0x85   :  { %1973 = vmatpush.bf16.msrb.mxu0 %v2363_v0  ;;  %v3535_v0 = vld [vmem:[#allocation5 + $0x27c] sm:$0xf] }
  0x86   :  { %1986 = vmatpush.bf16.msrb.mxu1 %v2555_v1  ;;  %v2628_v1 = vld [vmem:[#allocation5 + $0x290] sm:$0xf0] }
  0x87   :  { %1999 = vmatpush.bf16.msrb.mxu2 %v2747_v2  ;;  %v3203_v2 = vor.u32 %v3682_v58, %v3202_v57  ;;  %v2631_v10 = vor.u32 %v3535_v0, %v2628_v1  ;;  %v3082_v57 = vld [vmem:[#allocation5 + $0x608] sm:$0xf]  ;;  %v3652_v58 = vld [vmem:[#allocation5 + $0x61c] sm:$0xf0]  ;;  %v2316_v1 = vld [vmem:[#allocation5 + $0x20] sm:$0xf0] }
  0x88   :  { %2012 = vmatpush.bf16.msrb.mxu3 %v2939_v6  ;;  %v3676_v6 = vld [vmem:[#allocation5 + $0x6dc] sm:$0xf0] }
  0x89   :  { %1974 = vmatpush.bf16.msrb.mxu0 %v2339_v14  ;;  %v3529_v14 = vld [vmem:[#allocation5 + $0x24c] sm:$0xf]  ;;  %v3179_v18 = vor.u32 %v3676_v6, %v3178_v5  ;;  %v2868_v5 = vld [vmem:[#allocation5 + $0x470] sm:$0xf0]  ;;  %v3643_v6 = vld [vmem:[#allocation5 + $0x5dc] sm:$0xf] }
  0x8a   :  { %1987 = vmatpush.bf16.msrb.mxu1 %v2531_v19  ;;  %v3371_v19 = vor.u32 %v3724_v11, %v3370_v7  ;;  %v3083_v7 = vor.u32 %v3652_v58, %v3082_v57  ;;  %v3691_v11 = vld [vmem:[#allocation5 + $0x75c] sm:$0xf]  ;;  %v3372_v57 = vld [vmem:[#allocation5 + $0x860] sm:$0xf0] }
  0x8b   :  { %2000 = vmatpush.bf16.msrb.mxu2 %v2723_v20  ;;  %v2415_v20 = vor.u32 %v3481_v12, %v2412_v13  ;;  %v3252_v12 = vld [vmem:[#allocation5 + $0x770] sm:$0xf0]  ;;  %v3275_v13 = vor.u32 %v3700_v62, %v3274_v61  ;;  %v3571_v61 = vld [vmem:[#allocation5 + $0x39c] sm:$0xf] }
  0x8c   :  { %2013 = vmatpush.bf16.msrb.mxu3 %v2915_v24  ;;  %v2607_v24 = vor.u32 %v3529_v14, %v2604_v15  ;;  %v2319_v14 = vor.u32 %v3457_v63, %v2316_v1  ;;  %v3739_v15 = vld [vmem:[#allocation5 + $0x8dc] sm:$0xf]  ;;  %v3255_v22 = vor.u32 %v3691_v11, %v3252_v12  ;;  %v2772_v62 = vld [vmem:[#allocation5 + $0x3b0] sm:$0xf0]  ;;  %v3565_v12 = vld [vmem:[#allocation5 + $0x36c] sm:$0xf] }
  0x8d   :  { %1975 = vmatpush.bf16.msrb.mxu0 %v2315_v31  ;;  %v3347_v31 = vor.u32 %v3718_v25, %v3346_v23  ;;  %v3589_v23 = vld [vmem:[#allocation5 + $0x42c] sm:$0xf]  ;;  %v3619_v63 = vld [vmem:[#allocation5 + $0x51c] sm:$0xf]  ;;  %v2964_v1 = vld [vmem:[#allocation5 + $0x530] sm:$0xf0] }
  0x8e   :  { %1988 = vmatpush.bf16.msrb.mxu1 %v2507_v37  ;;  %v3322_v37 = vld [vmem:[#allocation5 + $0x7e8] sm:$0xf]  ;;  %v3637_v25 = vld [vmem:[#allocation5 + $0x5ac] sm:$0xf] }
  0x8f   :  { %2001 = vmatpush.bf16.msrb.mxu2 %v2699_v38  ;;  %v2583_v38 = vor.u32 %v3523_v28, %v2580_v29  ;;  %v3323_v45 = vor.u32 %v3712_v39, %v3322_v37  ;;  %v3685_v28 = vld [vmem:[#allocation5 + $0x72c] sm:$0xf]  ;;  %v3228_v29 = vld [vmem:[#allocation5 + $0x740] sm:$0xf0]  ;;  %v3583_v37 = vld [vmem:[#allocation5 + $0x3fc] sm:$0xf] }
  0x90   :  { %2014 = vmatpush.bf16.msrb.mxu3 %v2891_v41  ;;  %1976 = vmatmul.bf16.vlgmr.msrb.gmra.mxu0 %v3888_v8  ;;  %v2364_v41 = vld [vmem:[#allocation5 + $0x80] sm:$0xf0]  ;;  %v3631_v39 = vld [vmem:[#allocation5 + $0x57c] sm:$0xf] }
  0x91   :  { %2020 = vmatpush.bf16.msra.mxu0 %v3251_v42  ;;  %1989 = vmatmul.bf16.vlgmr.msrb.gmra.mxu1 %v3894_v17  ;;  %v3517_v42 = vld [vmem:[#allocation5 + $0x1ec] sm:$0xf]  ;;  %v2367_v46 = vor.u32 %v3469_v40, %v2364_v41  ;;  %v3012_v41 = vld [vmem:[#allocation5 + $0x590] sm:$0xf0] }
  0x92   :  { %2033 = vmatpush.bf16.msra.mxu1 %v3443_v43  ;;  %2002 = vmatmul.bf16.vlgmr.msrb.gmra.mxu2 %v3890_v9  ;;  %v2556_v43 = vld [vmem:[#allocation5 + $0x200] sm:$0xf0] }
  0x93   :  { %2046 = vmatpush.bf16.msra.mxu2 %v2487_v44  ;;  %2015 = vmatmul.bf16.vlgmr.msrb.gmra.mxu3 %v3892_v16  ;;  %v3131_v44 = vor.u32 %v3664_v36, %v3130_v34  ;;  %v2559_v50 = vor.u32 %v3517_v42, %v2556_v43  ;;  %v3039_v34 = vor.u32 %v3637_v25, %v3036_v27  ;;  %v3679_v42 = vld [vmem:[#allocation5 + $0x6fc] sm:$0xf]  ;;  %v3204_v43 = vld [vmem:[#allocation5 + $0x710] sm:$0xf0] }
  0x94   :  { %2059 = vmatpush.bf16.msra.mxu3 %v2679_v48  ;;  %v3658_v48 = vld [vmem:[#allocation5 + $0x64c] sm:$0xf0]  ;;  %v3231_v36 = vor.u32 %v3685_v28, %v3228_v29  ;;  %v2724_v29 = vld [vmem:[#allocation5 + $0x350] sm:$0xf0] }
  0x95   :  { %2021 = vmatpush.bf16.msra.mxu0 %v3227_v54  ;;  %v3511_v54 = vld [vmem:[#allocation5 + $0x1bc] sm:$0xf] }
  0x96   :  { %2034 = vmatpush.bf16.msra.mxu1 %v3419_v55  ;;  %v2532_v55 = vld [vmem:[#allocation5 + $0x1d0] sm:$0xf0] }
  0x97   :  { %2047 = vmatpush.bf16.msra.mxu2 %v2463_v56  ;;  %v3107_v56 = vor.u32 %v3658_v48, %v3106_v47  ;;  %v2535_v0 = vor.u32 %v3511_v54, %v2532_v55  ;;  %v3015_v47 = vor.u32 %v3631_v39, %v3012_v41  ;;  %v3207_v48 = vor.u32 %v3679_v42, %v3204_v43  ;;  %v3673_v54 = vld [vmem:[#allocation5 + $0x6cc] sm:$0xf]  ;;  %v3180_v55 = vld [vmem:[#allocation5 + $0x6e0] sm:$0xf0]  ;;  %v3703_v39 = vld [vmem:[#allocation5 + $0x7bc] sm:$0xf] }
  0x98   :  { %2060 = vmatpush.bf16.msra.mxu3 %v2655_v60  ;;  %v2343_v60 = vor.u32 %v3463_v52, %v2340_v53  ;;  %v2988_v53 = vld [vmem:[#allocation5 + $0x560] sm:$0xf0]  ;;  %v3553_v43 = vld [vmem:[#allocation5 + $0x30c] sm:$0xf] }
  0x99   :  { %2022 = vmatpush.bf16.msra.mxu0 %v3203_v2  ;;  %v3505_v2 = vld [vmem:[#allocation5 + $0x18c] sm:$0xf] }
  0x9a   :  { %2035 = vmatpush.bf16.msra.mxu1 %v3395_v3  ;;  %v2508_v3 = vld [vmem:[#allocation5 + $0x1a0] sm:$0xf0] }
  0x9b   :  { %2048 = vmatpush.bf16.msra.mxu2 %v2439_v4  ;;  %v3595_v4 = vld [vmem:[#allocation5 + $0x45c] sm:$0xf] }
  0x9c   :  { %2061 = vmatpush.bf16.msra.mxu3 %v2631_v10  ;;  %v3060_v10 = vld [vmem:[#allocation5 + $0x5f0] sm:$0xf0] }
  0x9d   :  { %2023 = vmatpush.bf16.msra.mxu0 %v3179_v18  ;;  %v3444_v18 = vld [vmem:[#allocation5 + $0x8f0] sm:$0xf0]  ;;  %v3063_v21 = vor.u32 %v3643_v6, %v3060_v10  ;;  %v2775_v6 = vor.u32 %v3571_v61, %v2772_v62  ;;  %v2967_v10 = vor.u32 %v3619_v63, %v2964_v1  ;;  %v3551_v61 = vld [vmem:[#allocation5 + $0x2f4] sm:$0xf0]  ;;  %v2874_v62 = vld [vmem:[#allocation5 + $0x460] sm:$0xf] }
  0x9e   :  { %2036 = vmatpush.bf16.msra.mxu1 %v3371_v19  ;;  %v2511_v19 = vor.u32 %v3505_v2, %v2508_v3  ;;  %v3447_v26 = vor.u32 %v3739_v15, %v3444_v18  ;;  %v3667_v2 = vld [vmem:[#allocation5 + $0x69c] sm:$0xf]  ;;  %v3156_v3 = vld [vmem:[#allocation5 + $0x6b0] sm:$0xf0]  ;;  %v2940_v18 = vld [vmem:[#allocation5 + $0x500] sm:$0xf0] }
  0x9f   :  { %2049 = vmatpush.bf16.msra.mxu2 %v2415_v20  ;;  %v2871_v20 = vor.u32 %v3595_v4, %v2868_v5  ;;  %v3715_v4 = vld [vmem:[#allocation5 + $0x81c] sm:$0xf]  ;;  %v3348_v5 = vld [vmem:[#allocation5 + $0x830] sm:$0xf0]  ;;  %v3159_v11 = vor.u32 %v3667_v2, %v3156_v3  ;;  %v3599_v63 = vld [vmem:[#allocation5 + $0x474] sm:$0xf0] }
  0xa0   :  { %2062 = vmatpush.bf16.msra.mxu3 %v2607_v24  ;;  %v2844_v24 = vld [vmem:[#allocation5 + $0x440] sm:$0xf0]  ;;  %v3351_v15 = vor.u32 %v3715_v4, %v3348_v5  ;;  %v3066_v2 = vld [vmem:[#allocation5 + $0x5e0] sm:$0xf]  ;;  %v3647_v3 = vld [vmem:[#allocation5 + $0x5f4] sm:$0xf0] }
  0xa1   :  { %2024 = vmatpush.bf16.msra.mxu0 %v3155_v30  ;;  %v3733_v30 = vld [vmem:[#allocation5 + $0x8ac] sm:$0xf] }
  0xa2   :  { %2037 = vmatpush.bf16.msra.mxu1 %v3347_v31  ;;  %v3420_v31 = vld [vmem:[#allocation5 + $0x8c0] sm:$0xf0] }
  0xa3   :  { %2050 = vmatpush.bf16.msra.mxu2 %v2391_v33  ;;  %v2847_v33 = vor.u32 %v3589_v23, %v2844_v24  ;;  %v3423_v40 = vor.u32 %v3733_v30, %v3420_v31  ;;  %v3920_v23 = vld [vmem:[#allocation7] sm:$0x3f]  ;;  %v3607_v30 = vld [vmem:[#allocation5 + $0x4bc] sm:$0xf]  ;;  %v2916_v31 = vld [vmem:[#allocation5 + $0x4d0] sm:$0xf0] }
  0xa4   :  { %2063 = vmatpush.bf16.msra.mxu3 %v2583_v38  ;;  %v2820_v38 = vld [vmem:[#allocation5 + $0x410] sm:$0xf0] }
  0xa5   :  { %2025 = vmatpush.bf16.msra.mxu0 %v3131_v44  ;;  %v3727_v44 = vld [vmem:[#allocation5 + $0x87c] sm:$0xf] }
  0xa6   :  { %2038 = vmatpush.bf16.msra.mxu1 %v3323_v45  ;;  %v3396_v45 = vld [vmem:[#allocation5 + $0x890] sm:$0xf0] }
  0xa7   :  { %2051 = vmatpush.bf16.msra.mxu2 %v2367_v46  ;;  %v2823_v46 = vor.u32 %v3583_v37, %v2820_v38  ;;  %v3399_v52 = vor.u32 %v3727_v44, %v3396_v45  ;;  %v360_v37 = vperm.slane %v3920_v23, 0  ;;  %v2700_v44 = vld [vmem:[#allocation5 + $0x320] sm:$0xf0] }
  0xa8   :  { %2064 = vmatpush.bf16.msra.mxu3 %v2559_v50  ;;  %v2796_v50 = vld [vmem:[#allocation5 + $0x3e0] sm:$0xf0] }
  0xa9   :  { %2026 = vmatpush.bf16.msra.mxu0 %v3107_v56  ;;  %v3721_v56 = vld [vmem:[#allocation5 + $0x84c] sm:$0xf]  ;;  %v2799_v58 = vor.u32 %v3577_v49, %v2796_v50  ;;  %v2892_v49 = vld [vmem:[#allocation5 + $0x4a0] sm:$0xf0] }
  0xaa   :  { %2039 = vmatpush.bf16.msra.mxu1 %v3299_v59  ;;  %v2991_v59 = vor.u32 %v3625_v51, %v2988_v53  ;;  %v3649_v50 = vld [vmem:[#allocation5 + $0x60c] sm:$0xf] }
  0xab   :  { %2052 = vmatpush.bf16.msra.mxu2 %v2343_v60  ;;  %v3183_v60 = vor.u32 %v3673_v54, %v3180_v55  ;;  %v3697_v53 = vld [vmem:[#allocation5 + $0x78c] sm:$0xf]  ;;  %v3276_v54 = vld [vmem:[#allocation5 + $0x7a0] sm:$0xf0] }
  0xac   :  { %2065 = vmatpush.bf16.msra.mxu3 %v2535_v0  ;;  %v3375_v0 = vor.u32 %v3721_v56, %v3372_v57  ;;  %v2490_v56 = vld [vmem:[#allocation5 + $0x160] sm:$0xf]  ;;  %v3503_v57 = vld [vmem:[#allocation5 + $0x174] sm:$0xf0]  ;;  %v3279_v4 = vor.u32 %v3697_v53, %v3276_v54  ;;  %v3629_v53 = vld [vmem:[#allocation5 + $0x564] sm:$0xf0] }
  0xad   :  { %2027 = vmatpush.bf16.msra.mxu0 %v3083_v7  ;;  %v1821_v7 = vpop.f32.mrf.mxu0  ;;  %v2491_v5 = vor.u32 %v3503_v57, %v2490_v56 }
  0xae   :  { %2040 = vmatpush.bf16.msra.mxu1 %v3275_v13  ;;  %v2748_v13 = vld [vmem:[#allocation5 + $0x380] sm:$0xf0]  ;;  %v1834_v24 = vpop.f32.mrf.mxu1  ;;  %v1822_v55 = vadd.f32 %v1821_v7, %v360_v37  ;;  %v3587_v37 = vld [vmem:[#allocation5 + $0x414] sm:$0xf0] }
  0xaf   :  { %2053 = vmatpush.bf16.msra.mxu2 %v2319_v14  ;;  %v3613_v14 = vld [vmem:[#allocation5 + $0x4ec] sm:$0xf]  ;;  %v2751_v25 = vor.u32 %v3565_v12, %v2748_v13  ;;  %v2466_v12 = vld [vmem:[#allocation5 + $0x130] sm:$0xf]  ;;  %v3497_v13 = vld [vmem:[#allocation5 + $0x144] sm:$0xf0] }
  0xb0   :  { %2066 = vmatpush.bf16.msra.mxu3 %v2511_v19  ;;  %2028 = vmatmul.bf16.vlgmr.msra.gmra.mxu0 %v3900_v32  ;;  %v3661_v19 = vld [vmem:[#allocation5 + $0x66c] sm:$0xf]  ;;  %v2943_v27 = vor.u32 %v3613_v14, %v2940_v18  ;;  %v2658_v14 = vld [vmem:[#allocation5 + $0x2b0] sm:$0xf]  ;;  %v3067_v18 = vor.u32 %v3647_v3, %v3066_v2  ;;  %v2970_v3 = vld [vmem:[#allocation5 + $0x520] sm:$0xf] }
  0xb1   :  { %2072 = vmatpush.bf16.msrb.mxu0 %v2871_v20  ;;  %2041 = vmatmul.bf16.vlgmr.msra.gmra.mxu1 %v3902_v35  ;;  %v3132_v20 = vld [vmem:[#allocation5 + $0x680] sm:$0xf0] }
  0xb2   :  { %2085 = vmatpush.bf16.msrb.mxu1 %v3063_v21  ;;  %2054 = vmatmul.bf16.vlgmr.msra.gmra.mxu2 %v3888_v8  ;;  %v3709_v21 = vld [vmem:[#allocation5 + $0x7ec] sm:$0xf]  ;;  %v3135_v28 = vor.u32 %v3661_v19, %v3132_v20  ;;  %v3545_v19 = vld [vmem:[#allocation5 + $0x2c4] sm:$0xf0]  ;;  %v2850_v20 = vld [vmem:[#allocation5 + $0x430] sm:$0xf] }
  0xb3   :  { %2098 = vmatpush.bf16.msrb.mxu2 %v3255_v22  ;;  %2067 = vmatmul.bf16.vlgmr.msra.gmra.mxu3 %v3894_v17  ;;  %v3324_v22 = vld [vmem:[#allocation5 + $0x800] sm:$0xf0] }
  0xb4   :  { %2111 = vmatpush.bf16.msrb.mxu3 %v3447_v26  ;;  %v3559_v26 = vld [vmem:[#allocation5 + $0x33c] sm:$0xf] }
  0xb5   :  { %2073 = vmatpush.bf16.msrb.mxu0 %v2847_v33  ;;  %v3327_v33 = vor.u32 %v3709_v21, %v3324_v22  ;;  %v1847_v38 = vpop.f32.mrf.mxu2  ;;  %v2727_v42 = vor.u32 %v3559_v26, %v2724_v29  ;;  %v1823_v45 = vpop.f32.mrf.mxu0  ;;  %v3593_v21 = vld [vmem:[#allocation5 + $0x444] sm:$0xf0]  ;;  %v3042_v22 = vld [vmem:[#allocation5 + $0x5b0] sm:$0xf]  ;;  %v2467_v26 = vor.u32 %v3497_v13, %v2466_v12  ;;  %v2442_v29 = vld [vmem:[#allocation5 + $0x100] sm:$0xf] }
  0xb6   :  { %2086 = vmatpush.bf16.msrb.mxu1 %v3039_v34  ;;  %v3655_v34 = vld [vmem:[#allocation5 + $0x63c] sm:$0xf]  ;;  %v3923_v41 = vpop.f32.mrf.mxu3  ;;  %v2418_v45 = vld [vmem:[#allocation5 + $0xd0] sm:$0xf] }
  0xb7   :  { %2099 = vmatpush.bf16.msrb.mxu2 %v3231_v36  ;;  %v3108_v36 = vld [vmem:[#allocation5 + $0x650] sm:$0xf0]  ;;  %v2562_v12 = vld [vmem:[#allocation5 + $0x1f0] sm:$0xf] }
  0xb8   :  { %2112 = vmatpush.bf16.msrb.mxu3 %v3423_v40  ;;  %v3300_v40 = vld [vmem:[#allocation5 + $0x7d0] sm:$0xf0] }
  0xb9   :  { %2074 = vmatpush.bf16.msrb.mxu0 %v2823_v46  ;;  %v2919_v46 = vor.u32 %v3607_v30, %v2916_v31  ;;  %v3303_v51 = vor.u32 %v3703_v39, %v3300_v40  ;;  %v3491_v30 = vld [vmem:[#allocation5 + $0x114] sm:$0xf0]  ;;  %v2634_v31 = vld [vmem:[#allocation5 + $0x280] sm:$0xf] }
  0xba   :  { %2087 = vmatpush.bf16.msrb.mxu1 %v3015_v47  ;;  %v3111_v47 = vor.u32 %v3655_v34, %v3108_v36  ;;  %v3539_v34 = vld [vmem:[#allocation5 + $0x294] sm:$0xf0]  ;;  %v2826_v36 = vld [vmem:[#allocation5 + $0x400] sm:$0xf] }
  0xbb   :  { %2100 = vmatpush.bf16.msrb.mxu2 %v3207_v48  ;;  %v3601_v48 = vld [vmem:[#allocation5 + $0x48c] sm:$0xf]  ;;  %v3018_v39 = vld [vmem:[#allocation5 + $0x580] sm:$0xf] }
  0xbc   :  { %2113 = vmatpush.bf16.msrb.mxu3 %v3399_v52  ;;  %v3084_v52 = vld [vmem:[#allocation5 + $0x620] sm:$0xf0] }
  0xbd   :  { %2075 = vmatpush.bf16.msrb.mxu0 %v2799_v58  ;;  %v2682_v58 = vld [vmem:[#allocation5 + $0x2e0] sm:$0xf]  ;;  %v3087_v1 = vor.u32 %v3649_v50, %v3084_v52  ;;  %v1849_v7 = vpop.f32.mrf.mxu2  ;;  %v2802_v50 = vld [vmem:[#allocation5 + $0x3d0] sm:$0xf] }
  0xbe   :  { %2088 = vmatpush.bf16.msrb.mxu1 %v2991_v59  ;;  %v1836_v59 = vpop.f32.mrf.mxu1  ;;  %v2994_v52 = vld [vmem:[#allocation5 + $0x550] sm:$0xf] }
  0xbf   :  { %2101 = vmatpush.bf16.msrb.mxu2 %v3183_v60  ;;  %v2703_v60 = vor.u32 %v3553_v43, %v2700_v44  ;;  %v2635_v43 = vor.u32 %v3539_v34, %v2634_v31  ;;  %v2827_v44 = vor.u32 %v3587_v37, %v2826_v36  ;;  %v2394_v59 = vld [vmem:[#allocation5 + $0xa0] sm:$0xf]  ;;  %v3515_v34 = vld [vmem:[#allocation5 + $0x1d4] sm:$0xf0] }
  0xc0   :  { %2114 = vmatpush.bf16.msrb.mxu3 %v3375_v0  ;;  %v2895_v0 = vor.u32 %v3601_v48, %v2892_v49  ;;  %v3533_v49 = vld [vmem:[#allocation5 + $0x264] sm:$0xf0]  ;;  %v2538_v31 = vld [vmem:[#allocation5 + $0x1c0] sm:$0xf]  ;;  %v3563_v37 = vld [vmem:[#allocation5 + $0x354] sm:$0xf0] }
  0xc1   :  { %2076 = vmatpush.bf16.msrb.mxu0 %v2775_v6  ;;  %v1835_v6 = vadd.f32 %v1834_v24, %v1822_v55  ;;  %v2730_v36 = vld [vmem:[#allocation5 + $0x340] sm:$0xf] }
  0xc2   :  { %2089 = vmatpush.bf16.msrb.mxu1 %v2967_v10  ;;  %v2683_v10 = vor.u32 %v3551_v61, %v2682_v58  ;;  %v2586_v61 = vld [vmem:[#allocation5 + $0x220] sm:$0xf] }
  0xc3   :  { %2102 = vmatpush.bf16.msrb.mxu2 %v3159_v11  ;;  %v2875_v11 = vor.u32 %v3599_v63, %v2874_v62  ;;  %v1848_v24 = vadd.f32 %v1847_v38, %v1835_v6  ;;  %v3635_v38 = vld [vmem:[#allocation5 + $0x594] sm:$0xf0]  ;;  %v2995_v62 = vor.u32 %v3629_v53, %v2994_v52  ;;  %v3605_v52 = vld [vmem:[#allocation5 + $0x4a4] sm:$0xf0] }
  0xc4   :  { %2115 = vmatpush.bf16.msrb.mxu3 %v3351_v15  ;;  %v1862_v15 = vpop.f32.mrf.mxu3  ;;  %v3019_v48 = vor.u32 %v3635_v38, %v3018_v39  ;;  %v3527_v63 = vld [vmem:[#allocation5 + $0x234] sm:$0xf0]  ;;  %v2922_v39 = vld [vmem:[#allocation5 + $0x4c0] sm:$0xf] }
  0xc5   :  { %2077 = vmatpush.bf16.msrb.mxu0 %v2751_v25  ;;  %v3641_v25 = vld [vmem:[#allocation5 + $0x5c4] sm:$0xf0]  ;;  %v1861_v40 = vadd.f32 %v3923_v41, %v1848_v24  ;;  %v2587_v6 = vor.u32 %v3527_v63, %v2586_v61  ;;  %v2754_v15 = vld [vmem:[#allocation5 + $0x370] sm:$0xf]  ;;  %v3611_v38 = vld [vmem:[#allocation5 + $0x4d4] sm:$0xf0] }
  0xc6   :  { %2090 = vmatpush.bf16.msrb.mxu1 %v2943_v27  ;;  %v2659_v27 = vor.u32 %v3545_v19, %v2658_v14  ;;  %v3521_v14 = vld [vmem:[#allocation5 + $0x204] sm:$0xf0]  ;;  %v3548_v63 = vld [vmem:[#allocation5 + $0x2e4] sm:$0xf] }
  0xc7   :  { %2103 = vmatpush.bf16.msrb.mxu2 %v3135_v28  ;;  %v2851_v28 = vor.u32 %v3593_v21, %v2850_v20  ;;  %v2946_v20 = vld [vmem:[#allocation5 + $0x4f0] sm:$0xf]  ;;  %v3617_v21 = vld [vmem:[#allocation5 + $0x504] sm:$0xf0] }
  0xc8   :  { %2116 = vmatpush.bf16.msrb.mxu3 %v3327_v33  ;;  %v3043_v33 = vor.u32 %v3641_v25, %v3042_v22 }
  0xc9   :  { %2078 = vmatpush.bf16.msrb.mxu0 %v2727_v42  ;;  %v2443_v42 = vor.u32 %v3491_v30, %v2442_v29  ;;  %v2346_v29 = vld [vmem:[#allocation5 + $0x40] sm:$0xf]  ;;  %v3467_v30 = vld [vmem:[#allocation5 + $0x54] sm:$0xf0] }
  0xca   :  { %2091 = vmatpush.bf16.msrb.mxu1 %v2919_v46  ;;  %v3485_v46 = vld [vmem:[#allocation5 + $0xe4] sm:$0xf0] }
  0xcb   :  { %2104 = vmatpush.bf16.msrb.mxu2 %v3111_v47  ;;  %v2610_v47 = vld [vmem:[#allocation5 + $0x250] sm:$0xf]  ;;  %v2419_v41 = vor.u32 %v3485_v46, %v2418_v45  ;;  %v2731_v45 = vor.u32 %v3563_v37, %v2730_v36  ;;  %v2636_v36 = vld [vmem:[#allocation5 + $0x298] sm:$0xf0] }
  0xcc   :  { %2117 = vmatpush.bf16.msrb.mxu3 %v3303_v51  ;;  %v3581_v51 = vld [vmem:[#allocation5 + $0x3e4] sm:$0xf0]  ;;  %v2611_v57 = vor.u32 %v3533_v49, %v2610_v47  ;;  %v2514_v46 = vld [vmem:[#allocation5 + $0x190] sm:$0xf]  ;;  %v2923_v49 = vor.u32 %v3611_v38, %v2922_v39 }
  0xcd   :  { %2079 = vmatpush.bf16.msrb.mxu0 %v2703_v60  ;;  %v1873_v54 = vpop.f32.mrf.mxu0  ;;  %v2803_v58 = vor.u32 %v3581_v51, %v2802_v50  ;;  %v3479_v60 = vld [vmem:[#allocation5 + $0xb4] sm:$0xf0]  ;;  %v3509_v47 = vld [vmem:[#allocation5 + $0x1a4] sm:$0xf0]  ;;  %v2898_v51 = vld [vmem:[#allocation5 + $0x490] sm:$0xf] }
  0xce   :  { %2092 = vmatpush.bf16.msrb.mxu1 %v2895_v0  ;;  %v1874_v55 = vadd.f32 %v1873_v54, %v1861_v40  ;;  %v1886_v56 = vpop.f32.mrf.mxu1  ;;  %v2778_v0 = vld [vmem:[#allocation5 + $0x3a0] sm:$0xf]  ;;  %v2347_v40 = vor.u32 %v3467_v30, %v2346_v29  ;;  %v3557_v50 = vld [vmem:[#allocation5 + $0x324] sm:$0xf0]  ;;  %v2515_v61 = vor.u32 %v3509_v47, %v2514_v46  ;;  %v3731_v30 = vld [vmem:[#allocation5 + $0x894] sm:$0xf0] }
  0xcf   :  { %2105 = vmatpush.bf16.msrb.mxu2 %v3087_v1  ;;  %v3575_v1 = vld [vmem:[#allocation5 + $0x3b4] sm:$0xf0]  ;;  %v3258_v54 = vld [vmem:[#allocation5 + $0x760] sm:$0xf]  ;;  %v3482_v46 = vld [vmem:[#allocation5 + $0xd4] sm:$0xf] }
  0xd0   :  { %2118 = vmatpush.bf16.msrb.mxu3 %v3279_v4  ;;  %2080 = vmatmul.bf16.vlgmr.msrb.gmra.mxu0 %v3890_v9  ;;  %v1887_v2 = vadd.f32 %v1886_v56, %v1874_v55  ;;  %v3623_v4 = vld [vmem:[#allocation5 + $0x534] sm:$0xf0]  ;;  %v2779_v7 = vor.u32 %v3575_v1, %v2778_v0  ;;  %v3450_v55 = vld [vmem:[#allocation5 + $0x8e0] sm:$0xf]  ;;  %v2684_v0 = vld [vmem:[#allocation5 + $0x2f8] sm:$0xf0]  ;;  %v2899_v1 = vor.u32 %v3605_v52, %v2898_v51 }
  0xd1   :  { %2124 = vmatpush.bf16.msra.mxu0 %v2491_v5  ;;  %2093 = vmatmul.bf16.vlgmr.msrb.gmra.mxu1 %v3892_v16  ;;  %v2395_v5 = vor.u32 %v3479_v60, %v2394_v59  ;;  %v2971_v13 = vor.u32 %v3623_v4, %v2970_v3  ;;  %v3500_v59 = vld [vmem:[#allocation5 + $0x164] sm:$0xf]  ;;  %v2492_v60 = vld [vmem:[#allocation5 + $0x178] sm:$0xf0]  ;;  %v3234_v3 = vld [vmem:[#allocation5 + $0x730] sm:$0xf] }
  0xd2   :  { %2137 = vmatpush.bf16.msra.mxu1 %v2683_v10  ;;  %2106 = vmatmul.bf16.vlgmr.msrb.gmra.mxu2 %v3900_v32  ;;  %2280 = vst [vmem:[#allocation8] sm:$0xff] %v1887_v2  ;;  %v2370_v10 = vld [vmem:[#allocation5 + $0x70] sm:$0xf]  ;;  %v2420_v47 = vld [vmem:[#allocation5 + $0xe8] sm:$0xf0] }
  0xd3   :  { %2150 = vmatpush.bf16.msra.mxu2 %v2875_v11  ;;  %2119 = vmatmul.bf16.vlgmr.msrb.gmra.mxu3 %v3902_v35  ;;  %v3473_v11 = vld [vmem:[#allocation5 + $0x84] sm:$0xf0] }
  0xd4   :  { %2163 = vmatpush.bf16.msra.mxu3 %v3067_v18  ;;  %v3569_v18 = vld [vmem:[#allocation5 + $0x384] sm:$0xf0] }
  0xd5   :  { %2125 = vmatpush.bf16.msra.mxu0 %v2467_v26  ;;  %v3930_v19 = vpop.f32.mrf.mxu2  ;;  %v1875_v25 = vpop.f32.mrf.mxu0  ;;  %v2371_v26 = vor.u32 %v3473_v11, %v2370_v10  ;;  %v361_v10 = vperm.slane %v3920_v23, 1  ;;  %v2687_v11 = vor.u32 %v3548_v63, %v2684_v0 }
  0xd6   :  { %2138 = vmatpush.bf16.msra.mxu1 %v2659_v27  ;;  %v3932_v22 = vpop.f32.mrf.mxu3  ;;  %v1888_v24 = vpop.f32.mrf.mxu1  ;;  %v2563_v27 = vor.u32 %v3521_v14, %v2562_v12  ;;  %v3737_v12 = vld [vmem:[#allocation5 + $0x8c4] sm:$0xf0]  ;;  %v2468_v14 = vld [vmem:[#allocation5 + $0x148] sm:$0xf0] }
  0xd7   :  { %2151 = vmatpush.bf16.msra.mxu2 %v2851_v28  ;;  %v2755_v28 = vor.u32 %v3569_v18, %v2754_v15  ;;  %v3542_v15 = vld [vmem:[#allocation5 + $0x2b4] sm:$0xf]  ;;  %v2660_v18 = vld [vmem:[#allocation5 + $0x2c8] sm:$0xf0]  ;;  %v3210_v24 = vld [vmem:[#allocation5 + $0x700] sm:$0xf] }
  0xd8   :  { %2164 = vmatpush.bf16.msra.mxu3 %v3043_v33  ;;  %v2947_v33 = vor.u32 %v3617_v21, %v2946_v20  ;;  %v2663_v29 = vor.u32 %v3542_v15, %v2660_v18  ;;  %v3518_v15 = vld [vmem:[#allocation5 + $0x1f4] sm:$0xf]  ;;  %v2564_v18 = vld [vmem:[#allocation5 + $0x208] sm:$0xf0] }
  0xd9   :  { %2126 = vmatpush.bf16.msra.mxu0 %v2443_v42  ;;  %v2322_v42 = vld [vmem:[#allocation5 + $0x10] sm:$0xf] }
  0xda   :  { %2139 = vmatpush.bf16.msra.mxu1 %v2635_v43  ;;  %v3461_v43 = vld [vmem:[#allocation5 + $0x24] sm:$0xf0] }
  0xdb   :  { %2152 = vmatpush.bf16.msra.mxu2 %v2827_v44  ;;  %v2539_v44 = vor.u32 %v3515_v34, %v2538_v31  ;;  %v3488_v31 = vld [vmem:[#allocation5 + $0x104] sm:$0xf] }
  0xdc   :  { %2165 = vmatpush.bf16.msra.mxu3 %v3019_v48  ;;  %v2706_v48 = vld [vmem:[#allocation5 + $0x310] sm:$0xf]  ;;  %v3536_v34 = vld [vmem:[#allocation5 + $0x284] sm:$0xf] }
  0xdd   :  { %2127 = vmatpush.bf16.msra.mxu0 %v2419_v41  ;;  %v1901_v53 = vpop.f32.mrf.mxu2  ;;  %v3695_v41 = vld [vmem:[#allocation5 + $0x774] sm:$0xf0] }
  0xde   :  { %2140 = vmatpush.bf16.msra.mxu1 %v2611_v57  ;;  %v1914_v56 = vpop.f32.mrf.mxu3  ;;  %v2323_v57 = vor.u32 %v3461_v43, %v2322_v42  ;;  %v3259_v2 = vor.u32 %v3695_v41, %v3258_v54  ;;  %v3677_v42 = vld [vmem:[#allocation5 + $0x6e4] sm:$0xf0]  ;;  %v3378_v43 = vld [vmem:[#allocation5 + $0x850] sm:$0xf]  ;;  %v2423_v53 = vor.u32 %v3482_v46, %v2420_v47  ;;  %v3671_v54 = vld [vmem:[#allocation5 + $0x6b4] sm:$0xf0] }
  0xdf   :  { %2153 = vmatpush.bf16.msra.mxu2 %v2803_v58  ;;  %v3743_v58 = vld [vmem:[#allocation5 + $0x8f4] sm:$0xf0]  ;;  %v3354_v41 = vld [vmem:[#allocation5 + $0x820] sm:$0xf]  ;;  %v3458_v46 = vld [vmem:[#allocation5 + $0x14] sm:$0xf] }
  0xe0   :  { %2166 = vmatpush.bf16.msra.mxu3 %v2995_v62  ;;  %v2707_v62 = vor.u32 %v3557_v50, %v2706_v48  ;;  %v3451_v4 = vor.u32 %v3743_v58, %v3450_v55  ;;  %v3530_v48 = vld [vmem:[#allocation5 + $0x254] sm:$0xf]  ;;  %v3719_v58 = vld [vmem:[#allocation5 + $0x834] sm:$0xf0] }
  0xe1   :  { %2128 = vmatpush.bf16.msra.mxu0 %v2395_v5  ;;  %v2495_v5 = vor.u32 %v3500_v59, %v2492_v60  ;;  %v3476_v59 = vld [vmem:[#allocation5 + $0xa4] sm:$0xf]  ;;  %v2396_v60 = vld [vmem:[#allocation5 + $0xb8] sm:$0xf0] }
  0xe2   :  { %2141 = vmatpush.bf16.msra.mxu1 %v2587_v6  ;;  %v3689_v6 = vld [vmem:[#allocation5 + $0x744] sm:$0xf0] }
  0xe3   :  { %2154 = vmatpush.bf16.msra.mxu2 %v2779_v7  ;;  %v3426_v7 = vld [vmem:[#allocation5 + $0x8b0] sm:$0xf]  ;;  %v3235_v20 = vor.u32 %v3689_v6, %v3234_v3 }
  0xe4   :  { %2167 = vmatpush.bf16.msra.mxu3 %v2971_v13  ;;  %v3494_v13 = vld [vmem:[#allocation5 + $0x134] sm:$0xf]  ;;  %v3427_v21 = vor.u32 %v3737_v12, %v3426_v7  ;;  %v3138_v3 = vld [vmem:[#allocation5 + $0x670] sm:$0xf]  ;;  %v2372_v12 = vld [vmem:[#allocation5 + $0x88] sm:$0xf0] }
  0xe5   :  { %2129 = vmatpush.bf16.msra.mxu0 %v2371_v26  ;;  %v2471_v25 = vor.u32 %v3494_v13, %v2468_v14  ;;  %v1900_v26 = vadd.f32 %v3930_v19, %v361_v10  ;;  %v3713_v10 = vld [vmem:[#allocation5 + $0x804] sm:$0xf0] }
  0xe6   :  { %2142 = vmatpush.bf16.msra.mxu1 %v2563_v27  ;;  %v3683_v27 = vld [vmem:[#allocation5 + $0x714] sm:$0xf0] }
  0xe7   :  { %2155 = vmatpush.bf16.msra.mxu2 %v2755_v28  ;;  %v3402_v28 = vld [vmem:[#allocation5 + $0x880] sm:$0xf]  ;;  %v3211_v37 = vor.u32 %v3683_v27, %v3210_v24  ;;  %v1913_v19 = vadd.f32 %v3932_v22, %v1900_v26 }
  0xe8   :  { %2168 = vmatpush.bf16.msra.mxu3 %v2947_v33  ;;  %v2444_v33 = vld [vmem:[#allocation5 + $0x118] sm:$0xf0]  ;;  %v3403_v39 = vor.u32 %v3731_v30, %v3402_v28  ;;  %v3162_v22 = vld [vmem:[#allocation5 + $0x6a0] sm:$0xf]  ;;  %v3659_v28 = vld [vmem:[#allocation5 + $0x654] sm:$0xf0] }
  0xe9   :  { %2130 = vmatpush.bf16.msra.mxu0 %v2347_v40  ;;  %v2447_v38 = vor.u32 %v3488_v31, %v2444_v33  ;;  %v3186_v40 = vld [vmem:[#allocation5 + $0x6d0] sm:$0xf]  ;;  %v3163_v0 = vor.u32 %v3671_v54, %v3162_v22  ;;  %v3707_v30 = vld [vmem:[#allocation5 + $0x7d4] sm:$0xf0]  ;;  %v2567_v33 = vor.u32 %v3518_v15, %v2564_v18  ;;  %v2876_v22 = vld [vmem:[#allocation5 + $0x478] sm:$0xf0] }
  0xea   :  { %2143 = vmatpush.bf16.msra.mxu1 %v2539_v44  ;;  %v2639_v44 = vor.u32 %v3536_v34, %v2636_v36  ;;  %v3187_v50 = vor.u32 %v3677_v42, %v3186_v40  ;;  %v3464_v34 = vld [vmem:[#allocation5 + $0x44] sm:$0xf]  ;;  %v2348_v36 = vld [vmem:[#allocation5 + $0x58] sm:$0xf0]  ;;  %v3653_v40 = vld [vmem:[#allocation5 + $0x624] sm:$0xf0] }
  0xeb   :  { %2156 = vmatpush.bf16.msra.mxu2 %v2731_v45  ;;  %v3725_v45 = vld [vmem:[#allocation5 + $0x864] sm:$0xf0]  ;;  %v3644_v54 = vld [vmem:[#allocation5 + $0x5e4] sm:$0xf] }
  0xec   :  { %2169 = vmatpush.bf16.msra.mxu3 %v2923_v49  ;;  %v2612_v49 = vld [vmem:[#allocation5 + $0x268] sm:$0xf0]  ;;  %v3379_v52 = vor.u32 %v3725_v45, %v3378_v43  ;;  %v2351_v43 = vor.u32 %v3464_v34, %v2348_v36  ;;  %v3701_v45 = vld [vmem:[#allocation5 + $0x7a4] sm:$0xf0]  ;;  %v3584_v18 = vld [vmem:[#allocation5 + $0x404] sm:$0xf] }
  0xed   :  { %2131 = vmatpush.bf16.msra.mxu0 %v2323_v57  ;;  %v1925_v51 = vpop.f32.mrf.mxu0  ;;  %v2615_v57 = vor.u32 %v3530_v48, %v2612_v49  ;;  %v2324_v49 = vld [vmem:[#allocation5 + $0x28] sm:$0xf0]  ;;  %v3578_v34 = vld [vmem:[#allocation5 + $0x3d4] sm:$0xf] }
  0xee   :  { %2144 = vmatpush.bf16.msra.mxu1 %v2515_v61  ;;  %v1926_v55 = vadd.f32 %v1925_v51, %v1913_v19  ;;  %v1938_v56 = vpop.f32.mrf.mxu1  ;;  %v3524_v61 = vld [vmem:[#allocation5 + $0x224] sm:$0xf]  ;;  %v2540_v19 = vld [vmem:[#allocation5 + $0x1d8] sm:$0xf0]  ;;  %v2516_v51 = vld [vmem:[#allocation5 + $0x1a8] sm:$0xf0] }
  0xef   :  { %2157 = vmatpush.bf16.msra.mxu2 %v2707_v62  ;;  %v2588_v62 = vld [vmem:[#allocation5 + $0x238] sm:$0xf0]  ;;  %v2804_v36 = vld [vmem:[#allocation5 + $0x3e8] sm:$0xf0] }
  0xf0   :  { %2170 = vmatpush.bf16.msra.mxu3 %v2899_v1  ;;  %2132 = vmatmul.bf16.vlgmr.msra.gmra.mxu0 %v3888_v8  ;;  %v1939_v63 = vadd.f32 %v1938_v56, %v1926_v55  ;;  %v3355_v1 = vor.u32 %v3719_v58, %v3354_v41  ;;  %v2591_v7 = vor.u32 %v3524_v61, %v2588_v62  ;;  %v3068_v55 = vld [vmem:[#allocation5 + $0x5f8] sm:$0xf0]  ;;  %v3692_v56 = vld [vmem:[#allocation5 + $0x764] sm:$0xf] }
  0xf1   :  { %2176 = vmatpush.bf16.msrb.mxu0 %v3259_v2  ;;  %2145 = vmatmul.bf16.vlgmr.msra.gmra.mxu1 %v3894_v17  ;;  %v2399_v2 = vor.u32 %v3476_v59, %v2396_v60  ;;  %v2327_v59 = vor.u32 %v3458_v46, %v2324_v49  ;;  %v3740_v60 = vld [vmem:[#allocation5 + $0x8e4] sm:$0xf]  ;;  %v3452_v61 = vld [vmem:[#allocation5 + $0x8f8] sm:$0xf0] }
  0xf2   :  { %2189 = vmatpush.bf16.msrb.mxu1 %v3451_v4  ;;  %2158 = vmatmul.bf16.vlgmr.msra.gmra.mxu2 %v3890_v9  ;;  %v3665_v4 = vld [vmem:[#allocation5 + $0x684] sm:$0xf0]  ;;  %v3572_v46 = vld [vmem:[#allocation5 + $0x3a4] sm:$0xf] }
  0xf3   :  { %2202 = vmatpush.bf16.msrb.mxu2 %v2495_v5  ;;  %2171 = vmatmul.bf16.vlgmr.msra.gmra.mxu3 %v3892_v16  ;;  %v3330_v5 = vld [vmem:[#allocation5 + $0x7f0] sm:$0xf] }
  0xf4   :  { %2215 = vmatpush.bf16.msrb.mxu3 %v2687_v11  ;;  %v3470_v11 = vld [vmem:[#allocation5 + $0x74] sm:$0xf]  ;;  %v3331_v24 = vor.u32 %v3713_v10, %v3330_v5  ;;  %v3455_v5 = vor.u32 %v3740_v60, %v3452_v61  ;;  %v3236_v10 = vld [vmem:[#allocation5 + $0x748] sm:$0xf0] }
  0xf5   :  { %2177 = vmatpush.bf16.msrb.mxu0 %v3235_v20  ;;  %v1951_v6 = vpop.f32.mrf.mxu2  ;;  %v3139_v20 = vor.u32 %v3665_v4, %v3138_v3  ;;  %v1927_v26 = vpop.f32.mrf.mxu0  ;;  %v2375_v27 = vor.u32 %v3470_v11, %v2372_v12  ;;  %v2852_v3 = vld [vmem:[#allocation5 + $0x448] sm:$0xf0]  ;;  %v3638_v4 = vld [vmem:[#allocation5 + $0x5b4] sm:$0xf] }
  0xf6   :  { %2190 = vmatpush.bf16.msrb.mxu1 %v3427_v21  ;;  %v1952_v13 = vadd.f32 %v1951_v6, %v1939_v63  ;;  %v1964_v14 = vpop.f32.mrf.mxu3  ;;  %v1940_v31 = vpop.f32.mrf.mxu1  ;;  %v3044_v6 = vld [vmem:[#allocation5 + $0x5c8] sm:$0xf0]  ;;  %v3734_v11 = vld [vmem:[#allocation5 + $0x8b4] sm:$0xf]  ;;  %v3020_v26 = vld [vmem:[#allocation5 + $0x598] sm:$0xf0] }
  0xf7   :  { %2203 = vmatpush.bf16.msrb.mxu2 %v2471_v25  ;;  %v3114_v25 = vld [vmem:[#allocation5 + $0x640] sm:$0xf]  ;;  %v3428_v12 = vld [vmem:[#allocation5 + $0x8c8] sm:$0xf0] }
  0xf8   :  { %2216 = vmatpush.bf16.msrb.mxu3 %v2663_v29  ;;  %v1965_v21 = vadd.f32 %v1964_v14, %v1952_v13  ;;  %v3306_v29 = vld [vmem:[#allocation5 + $0x7c0] sm:$0xf]  ;;  %v3047_v14 = vor.u32 %v3638_v4, %v3044_v6  ;;  %v2948_v61 = vld [vmem:[#allocation5 + $0x508] sm:$0xf0]  ;;  %v3560_v6 = vld [vmem:[#allocation5 + $0x344] sm:$0xf] }
  0xf9   :  { %2178 = vmatpush.bf16.msrb.mxu0 %v3211_v37  ;;  %v3512_v37 = vld [vmem:[#allocation5 + $0x1c4] sm:$0xf]  ;;  %v3307_v42 = vor.u32 %v3707_v30, %v3306_v29  ;;  %v3404_v29 = vld [vmem:[#allocation5 + $0x898] sm:$0xf0] }
  0xfa   :  { %2191 = vmatpush.bf16.msrb.mxu1 %v3403_v39  ;;  %2281 = vst [vmem:[#allocation8 + $0x8] sm:$0xff] %v1965_v21  ;;  %v3115_v39 = vor.u32 %v3659_v28, %v3114_v25  ;;  %v2543_v48 = vor.u32 %v3512_v37, %v2540_v19  ;;  %v3632_v21 = vld [vmem:[#allocation5 + $0x584] sm:$0xf]  ;;  %v3431_v25 = vor.u32 %v3734_v11, %v3428_v12  ;;  %v3626_v37 = vld [vmem:[#allocation5 + $0x554] sm:$0xf] }
  0xfb   :  { %2204 = vmatpush.bf16.msrb.mxu2 %v2447_v38  ;;  %v3090_v38 = vld [vmem:[#allocation5 + $0x610] sm:$0xf]  ;;  %v3728_v28 = vld [vmem:[#allocation5 + $0x884] sm:$0xf]  ;;  %v3023_v31 = vor.u32 %v3632_v21, %v3020_v26  ;;  %v2732_v11 = vld [vmem:[#allocation5 + $0x358] sm:$0xf0] }
  0xfc   :  { %2217 = vmatpush.bf16.msrb.mxu3 %v2639_v44  ;;  %v3282_v44 = vld [vmem:[#allocation5 + $0x790] sm:$0xf]  ;;  %v3091_v41 = vor.u32 %v3653_v40, %v3090_v38  ;;  %v3407_v19 = vor.u32 %v3728_v28, %v3404_v29  ;;  %v3674_v38 = vld [vmem:[#allocation5 + $0x6d4] sm:$0xf]  ;;  %v3608_v12 = vld [vmem:[#allocation5 + $0x4c4] sm:$0xf] }
  0xfd   :  { %2179 = vmatpush.bf16.msrb.mxu0 %v3187_v50  ;;  %v1953_v47 = vpop.f32.mrf.mxu2  ;;  %v3506_v50 = vld [vmem:[#allocation5 + $0x194] sm:$0xf]  ;;  %v3283_v58 = vor.u32 %v3701_v45, %v3282_v44  ;;  %v362_v21 = vperm.slane %v3920_v23, 2  ;;  %v3308_v26 = vld [vmem:[#allocation5 + $0x7d8] sm:$0xf0] }
  0xfe   :  { %2192 = vmatpush.bf16.msrb.mxu1 %v3379_v52  ;;  %v1966_v52 = vpop.f32.mrf.mxu3  ;;  %v2519_v62 = vor.u32 %v3506_v50, %v2516_v51  ;;  %v3722_v40 = vld [vmem:[#allocation5 + $0x854] sm:$0xf]  ;;  %v2780_v47 = vld [vmem:[#allocation5 + $0x3b8] sm:$0xf0] }
  0xff   :  { %2205 = vmatpush.bf16.msrb.mxu2 %v2423_v53  ;;  %v3596_v53 = vld [vmem:[#allocation5 + $0x464] sm:$0xf]  ;;  %v2972_v51 = vld [vmem:[#allocation5 + $0x538] sm:$0xf0]  ;;  %v3554_v29 = vld [vmem:[#allocation5 + $0x314] sm:$0xf] }
 0x100   :  { %2218 = vmatpush.bf16.msrb.mxu3 %v2615_v57  ;;  %v3260_v57 = vld [vmem:[#allocation5 + $0x778] sm:$0xf0]  ;;  %v2879_v63 = vor.u32 %v3596_v53, %v2876_v22  ;;  %v3668_v52 = vld [vmem:[#allocation5 + $0x6a4] sm:$0xf] }
 0x101   :  { %2180 = vmatpush.bf16.msrb.mxu0 %v3163_v0  ;;  %v3071_v0 = vor.u32 %v3644_v54, %v3068_v55  ;;  %v3164_v53 = vld [vmem:[#allocation5 + $0x6b8] sm:$0xf0]  ;;  %v3716_v22 = vld [vmem:[#allocation5 + $0x824] sm:$0xf] }
 0x102   :  { %2193 = vmatpush.bf16.msrb.mxu1 %v3355_v1  ;;  %v3263_v1 = vor.u32 %v3692_v56, %v3260_v57  ;;  %v3356_v54 = vld [vmem:[#allocation5 + $0x838] sm:$0xf0]  ;;  %v3167_v56 = vor.u32 %v3668_v52, %v3164_v53  ;;  %v3566_v57 = vld [vmem:[#allocation5 + $0x374] sm:$0xf] }
 0x103   :  { %2206 = vmatpush.bf16.msrb.mxu2 %v2399_v2  ;;  %v3590_v2 = vld [vmem:[#allocation5 + $0x434] sm:$0xf]  ;;  %v3359_v60 = vor.u32 %v3716_v22, %v3356_v54 }
 0x104   :  { %2219 = vmatpush.bf16.msrb.mxu3 %v2591_v7  ;;  %v3686_v7 = vld [vmem:[#allocation5 + $0x734] sm:$0xf]  ;;  %v2855_v13 = vor.u32 %v3590_v2, %v2852_v3  ;;  %v3332_v3 = vld [vmem:[#allocation5 + $0x808] sm:$0xf0] }
 0x105   :  { %2181 = vmatpush.bf16.msrb.mxu0 %v3139_v20  ;;  %v3239_v15 = vor.u32 %v3686_v7, %v3236_v10  ;;  %v2828_v20 = vld [vmem:[#allocation5 + $0x418] sm:$0xf0]  ;;  %v3710_v2 = vld [vmem:[#allocation5 + $0x7f4] sm:$0xf] }
 0x106   :  { %2194 = vmatpush.bf16.msrb.mxu1 %v3331_v24  ;;  %v3680_v24 = vld [vmem:[#allocation5 + $0x704] sm:$0xf]  ;;  %v2831_v30 = vor.u32 %v3584_v18, %v2828_v20  ;;  %v3116_v20 = vld [vmem:[#allocation5 + $0x658] sm:$0xf0] }
 0x107   :  { %2207 = vmatpush.bf16.msrb.mxu2 %v2375_v27  ;;  %v3212_v27 = vld [vmem:[#allocation5 + $0x718] sm:$0xf0]  ;;  %v3656_v18 = vld [vmem:[#allocation5 + $0x644] sm:$0xf] }
 0x108   :  { %2220 = vmatpush.bf16.msrb.mxu3 %v2567_v33  ;;  %v3215_v33 = vor.u32 %v3680_v24, %v3212_v27  ;;  %v2735_v24 = vor.u32 %v3560_v6, %v2732_v11  ;;  %v3119_v28 = vor.u32 %v3656_v18, %v3116_v20 }
 0x109   :  { %2182 = vmatpush.bf16.msrb.mxu0 %v3115_v39  ;;  %v2996_v39 = vld [vmem:[#allocation5 + $0x568] sm:$0xf0] }
 0x10a   :  { %2195 = vmatpush.bf16.msrb.mxu1 %v3307_v42  ;;  %v2999_v44 = vor.u32 %v3626_v37, %v2996_v39  ;;  %v3092_v37 = vld [vmem:[#allocation5 + $0x628] sm:$0xf0] }
 0x10b   :  { %2208 = vmatpush.bf16.msrb.mxu2 %v2351_v43  ;;  %v2807_v43 = vor.u32 %v3578_v34, %v2804_v36  ;;  %v2900_v34 = vld [vmem:[#allocation5 + $0x4a8] sm:$0xf0]  ;;  %v3650_v36 = vld [vmem:[#allocation5 + $0x614] sm:$0xf] }
 0x10c   :  { %2221 = vmatpush.bf16.msrb.mxu3 %v2543_v48  ;;  %v3620_v48 = vld [vmem:[#allocation5 + $0x524] sm:$0xf] }
 0x10d   :  { %2183 = vmatpush.bf16.msrb.mxu0 %v3091_v41  ;;  %v3945_v42 = vpop.f32.mrf.mxu0  ;;  %v2783_v41 = vor.u32 %v3572_v46, %v2780_v47  ;;  %v2975_v55 = vor.u32 %v3620_v48, %v2972_v51 }
 0x10e   :  { %2196 = vmatpush.bf16.msrb.mxu1 %v3283_v58  ;;  %v3947_v49 = vpop.f32.mrf.mxu1  ;;  %v2756_v58 = vld [vmem:[#allocation5 + $0x388] sm:$0xf0] }
 0x10f   :  { %2209 = vmatpush.bf16.msrb.mxu2 %v2327_v59  ;;  %v3614_v59 = vld [vmem:[#allocation5 + $0x4f4] sm:$0xf] }
 0x110   :  { %2222 = vmatpush.bf16.msrb.mxu3 %v2519_v62  ;;  %2184 = vmatmul.bf16.vlgmr.msrb.gmra.mxu0 %v3900_v32  ;;  %v3662_v62 = vld [vmem:[#allocation5 + $0x674] sm:$0xf]  ;;  %v2951_v7 = vor.u32 %v3614_v59, %v2948_v61 }
 0x111   :  { %2228 = vmatpush.bf16.msra.mxu0 %v2879_v63  ;;  %2197 = vmatmul.bf16.vlgmr.msrb.gmra.mxu1 %v3902_v35  ;;  %v3140_v63 = vld [vmem:[#allocation5 + $0x688] sm:$0xf0] }
 0x112   :  { %2241 = vmatpush.bf16.msra.mxu1 %v3071_v0  ;;  %2210 = vmatmul.bf16.vlgmr.msrb.gmra.mxu2 %v3888_v8  ;;  %v3188_v8 = vld [vmem:[#allocation5 + $0x6e8] sm:$0xf0]  ;;  %v3143_v10 = vor.u32 %v3662_v62, %v3140_v63 }
 0x113   :  { %2254 = vmatpush.bf16.msra.mxu2 %v3263_v1  ;;  %2223 = vmatmul.bf16.vlgmr.msrb.gmra.mxu3 %v3894_v17  ;;  %v3380_v17 = vld [vmem:[#allocation5 + $0x868] sm:$0xf0]  ;;  %v3191_v45 = vor.u32 %v3674_v38, %v3188_v8  ;;  %v3698_v8 = vld [vmem:[#allocation5 + $0x794] sm:$0xf] }
 0x114   :  { %2267 = vmatpush.bf16.msra.mxu3 %v3455_v5  ;;  %v3383_v50 = vor.u32 %v3722_v40, %v3380_v17  ;;  %v2759_v5 = vor.u32 %v3566_v57, %v2756_v58  ;;  %v3284_v40 = vld [vmem:[#allocation5 + $0x7a8] sm:$0xf0] }
 0x115   :  { %2229 = vmatpush.bf16.msra.mxu0 %v2855_v13  ;;  %v2003_v0 = vpop.f32.mrf.mxu2  ;;  %v1979_v4 = vpop.f32.mrf.mxu0  ;;  %v2924_v13 = vld [vmem:[#allocation5 + $0x4d8] sm:$0xf0] }
 0x116   :  { %2242 = vmatpush.bf16.msra.mxu1 %v3047_v14  ;;  %v2016_v1 = vpop.f32.mrf.mxu3  ;;  %v1992_v14 = vpop.f32.mrf.mxu1  ;;  %v2927_v27 = vor.u32 %v3608_v12, %v2924_v13 }
 0x117   :  { %2255 = vmatpush.bf16.msra.mxu2 %v3239_v15  ;;  %v3335_v15 = vor.u32 %v3710_v2, %v3332_v3 }
 0x118   :  { %2268 = vmatpush.bf16.msra.mxu3 %v3431_v25  ;;  %v3704_v25 = vld [vmem:[#allocation5 + $0x7c4] sm:$0xf] }
 0x119   :  { %2230 = vmatpush.bf16.msra.mxu0 %v2831_v30  ;;  %v2708_v30 = vld [vmem:[#allocation5 + $0x328] sm:$0xf0] }
 0x11a   :  { %2243 = vmatpush.bf16.msra.mxu1 %v3023_v31  ;;  %v3602_v31 = vld [vmem:[#allocation5 + $0x494] sm:$0xf]  ;;  %v2711_v17 = vor.u32 %v3554_v29, %v2708_v30 }
 0x11b   :  { %2256 = vmatpush.bf16.msra.mxu2 %v3215_v33  ;;  %v3311_v33 = vor.u32 %v3704_v25, %v3308_v26 }
 0x11c   :  { %2269 = vmatpush.bf16.msra.mxu3 %v3407_v19  ;;  %v1978_v19 = vadd.f32 %v3945_v42, %v362_v21 }
 0x11d   :  { %2231 = vmatpush.bf16.msra.mxu0 %v2807_v43  ;;  %v2005_v39 = vpop.f32.mrf.mxu2  ;;  %v2903_v43 = vor.u32 %v3602_v31, %v2900_v34 }
 0x11e   :  { %2244 = vmatpush.bf16.msra.mxu1 %v2999_v44  ;;  %v2018_v38 = vpop.f32.mrf.mxu3  ;;  %v3095_v44 = vor.u32 %v3650_v36, %v3092_v37  ;;  %v1991_v46 = vadd.f32 %v3947_v49, %v1978_v19 }
 0x11f   :  { %2257 = vmatpush.bf16.msra.mxu2 %v3191_v45  ;;  %v3287_v45 = vor.u32 %v3698_v8, %v3284_v40 }
 0x120   :  { %2270 = vmatpush.bf16.msra.mxu3 %v3383_v50  ;;  %v2004_v47 = vadd.f32 %v2003_v0, %v1991_v46 }
 0x121   :  { %2232 = vmatpush.bf16.msra.mxu0 %v2783_v41 }
 0x122   :  { %2245 = vmatpush.bf16.msra.mxu1 %v2975_v55  ;;  %v2017_v42 = vadd.f32 %v2016_v1, %v2004_v47 }
 0x123   :  { %2258 = vmatpush.bf16.msra.mxu2 %v3167_v56 }
 0x124   :  { %2271 = vmatpush.bf16.msra.mxu3 %v3359_v60 }
 0x125   :  { %2233 = vmatpush.bf16.msra.mxu0 %v2759_v5 }
 0x126   :  { %2246 = vmatpush.bf16.msra.mxu1 %v2951_v7 }
 0x127   :  { %2259 = vmatpush.bf16.msra.mxu2 %v3143_v10  ;;  %v3750_v10 = vld [vmem:[#allocation7] sm:$0x3f] }
 0x128   :  { %2272 = vmatpush.bf16.msra.mxu3 %v3335_v15  ;;  %v364_v11 = vperm.slane %v3750_v10, 4  ;;  %v365_v34 = vperm.slane %v3750_v10, 5 }
 0x129   :  { %2234 = vmatpush.bf16.msra.mxu0 %v2735_v24 }
 0x12a   :  { %2247 = vmatpush.bf16.msra.mxu1 %v2927_v27 }
 0x12b   :  { %2260 = vmatpush.bf16.msra.mxu2 %v3119_v28 }
 0x12c   :  { %2273 = vmatpush.bf16.msra.mxu3 %v3311_v33 }
 0x12d   :  { %2235 = vmatpush.bf16.msra.mxu0 %v2711_v17  ;;  %v2029_v48 = vpop.f32.mrf.mxu0 }
 0x12e   :  { %2248 = vmatpush.bf16.msra.mxu1 %v2903_v43  ;;  %v2030_v50 = vadd.f32 %v2029_v48, %v2017_v42  ;;  %v2042_v51 = vpop.f32.mrf.mxu1 }
 0x12f   :  { %2261 = vmatpush.bf16.msra.mxu2 %v3095_v44 }
 0x130   :  { %2274 = vmatpush.bf16.msra.mxu3 %v3287_v45  ;;  %2236 = vmatmul.bf16.vlgmr.msra.gmra.mxu0 %v3890_v9  ;;  %v2043_v52 = vadd.f32 %v2042_v51, %v2030_v50  ;;  %v363_v9 = vperm.slane %v3920_v23, 3 }
 0x131   :  { %2249 = vmatmul.bf16.vlgmr.msra.gmra.mxu1 %v3892_v16 }
 0x132   :  { %2262 = vmatmul.bf16.vlgmr.msra.gmra.mxu2 %v3900_v32  ;;  %2282 = vst [vmem:[#allocation8 + $0x10] sm:$0xff] %v2043_v52 }
 0x133   :  { %2275 = vmatmul.bf16.vlgmr.msra.gmra.mxu3 %v3902_v35 }
 0x135   :  { %v2055_v49 = vpop.f32.mrf.mxu2  ;;  %v2031_v22 = vpop.f32.mrf.mxu0 }
 0x136   :  { %v2068_v53 = vpop.f32.mrf.mxu3  ;;  %v2044_v54 = vpop.f32.mrf.mxu1  ;;  %v2056_v56 = vadd.f32 %v2055_v49, %v363_v9 }
 0x138   :  { %v2069_v16 = vadd.f32 %v2068_v53, %v2056_v56 }
 0x13d   :  { %v2057_v41 = vpop.f32.mrf.mxu2 }
 0x13e   :  { %v2070_v55 = vpop.f32.mrf.mxu3 }
 0x14d   :  { %v2081_v57 = vpop.f32.mrf.mxu0 }
 0x14e   :  { %v2082_v32 = vadd.f32 %v2081_v57, %v2069_v16  ;;  %v2094_v58 = vpop.f32.mrf.mxu1 }
 0x150   :  { %v2095_v35 = vadd.f32 %v2094_v58, %v2082_v32 }
 0x155   :  { %v2107_v59 = vpop.f32.mrf.mxu2  ;;  %v2083_v63 = vpop.f32.mrf.mxu0 }
 0x156   :  { %v2108_v60 = vadd.f32 %v2107_v59, %v2095_v35  ;;  %v2120_v61 = vpop.f32.mrf.mxu3  ;;  %v2096_v0 = vpop.f32.mrf.mxu1 }
 0x158   :  { %v2121_v62 = vadd.f32 %v2120_v61, %v2108_v60 }
 0x15a   :  { %2283 = vst [vmem:[#allocation8 + $0x18] sm:$0xff] %v2121_v62 }
 0x15d   :  { %v2109_v1 = vpop.f32.mrf.mxu2 }
 0x15e   :  { %v2122_v2 = vpop.f32.mrf.mxu3 }
 0x16d   :  { %v2133_v3 = vpop.f32.mrf.mxu0 }
 0x16e   :  { %v2146_v4 = vpop.f32.mrf.mxu1  ;;  %v2134_v12 = vadd.f32 %v2133_v3, %v364_v11 }
 0x170   :  { %v2147_v15 = vadd.f32 %v2146_v4, %v2134_v12 }
 0x175   :  { %v2159_v5 = vpop.f32.mrf.mxu2  ;;  %v2135_v23 = vpop.f32.mrf.mxu0 }
 0x176   :  { %v2172_v6 = vpop.f32.mrf.mxu3  ;;  %v2148_v7 = vpop.f32.mrf.mxu1  ;;  %v2160_v18 = vadd.f32 %v2159_v5, %v2147_v15 }
 0x178   :  { %v2173_v20 = vadd.f32 %v2172_v6, %v2160_v18 }
 0x17d   :  { %v2161_v13 = vpop.f32.mrf.mxu2 }
 0x17e   :  { %v2174_v14 = vpop.f32.mrf.mxu3 }
 0x18d   :  { %v2185_v21 = vpop.f32.mrf.mxu0 }
 0x18e   :  { %v2186_v25 = vadd.f32 %v2185_v21, %v2173_v20  ;;  %v2198_v26 = vpop.f32.mrf.mxu1 }
 0x190   :  { %v2199_v24 = vadd.f32 %v2198_v26, %v2186_v25 }
 0x192   :  { %2284 = vst [vmem:[#allocation8 + $0x20] sm:$0xff] %v2199_v24 }
 0x195   :  { %v2211_v27 = vpop.f32.mrf.mxu2  ;;  %v2187_v29 = vpop.f32.mrf.mxu0 }
 0x196   :  { %v2224_v28 = vpop.f32.mrf.mxu3  ;;  %v2200_v30 = vpop.f32.mrf.mxu1  ;;  %v2212_v36 = vadd.f32 %v2211_v27, %v365_v34 }
 0x198   :  { %v2225_v37 = vadd.f32 %v2224_v28, %v2212_v36 }
 0x19d   :  { %v2213_v31 = vpop.f32.mrf.mxu2 }
 0x19e   :  { %v2226_v33 = vpop.f32.mrf.mxu3 }
 0x1ad   :  { %v2237_v19 = vpop.f32.mrf.mxu0 }
 0x1ae   :  { %v2250_v39 = vpop.f32.mrf.mxu1  ;;  %v2238_v38 = vadd.f32 %v2237_v19, %v2225_v37 }
 0x1b0   :  { %v2251_v8 = vadd.f32 %v2250_v39, %v2238_v38 }
 0x1b5   :  { %v2263_v40 = vpop.f32.mrf.mxu2  ;;  %v2239_v44 = vpop.f32.mrf.mxu0 }
 0x1b6   :  { %v2264_v17 = vadd.f32 %v2263_v40, %v2251_v8  ;;  %v2276_v43 = vpop.f32.mrf.mxu3  ;;  %v2252_v45 = vpop.f32.mrf.mxu1 }
 0x1b8   :  { %v2277_v46 = vadd.f32 %v2276_v43, %v2264_v17 }
 0x1ba   :  { %2285 = vst [vmem:[#allocation8 + $0x28] sm:$0xff] %v2277_v46 }
 0x1bb   :  { %2296 = dma.vmem_to_hbm [thread:$0]  %s2292_s2, 768, %s2294_s30, [#allocation4]  }
 0x1bd   :  { %v2265_v47 = vpop.f32.mrf.mxu2 }
 0x1be   :  { %v2278_v42 = vpop.f32.mrf.mxu3 }
 0x1bf   :  { %3851 = dma.done.wait [#allocation4], 768  }
 0x1c0   :  { %3852 = vsyncadd [#allocation4], 4294966528 }
 0x1c1   :  { %2301 = vsyncpa [#allocation3], 1 }
 0x1c2   :  { %2302 = vsyncpa [#allocation6], 1 }
 0x1c3   :  { %2303 = vsyncpa [#allocation4], 1 }

</bundles_post_ra>
